<compile_context>
chip_gen: v5e
topology: v5e:2x2
jax: 0.10.0
libtpu: 0.0.40
codegen_flags: <defaults>
</compile_context>

<pallas_src>
import functools
import math

import jax
import jax.numpy as jnp
from jax.experimental import pallas as pl
from jax.experimental.pallas import tpu as pltpu


# Inner sub-chunk width (columns per unrolled inner step).  Keeps per-chunk
# intermediates inside the 64-vreg budget.
CHUNK = 256
# Maximum batch tile (columns) per grid step — amortizes the ~0.35 us
# per-grid-step overhead that dominates this tiny MLP.
MAX_TM = 2048

# Single-buffering resident operands (pl.Buffered(1)) is a minor VMEM/DMA
# optimisation; if this jax build rejects it we fall back to the default
# double-buffered pipeline (decision cached after the first call).
_RESIDENT_SINGLE_BUFFER = [True]


# ---------------------------------------------------------------------------
# Kernels
# ---------------------------------------------------------------------------
def _actor_tile_kernel(x_ref, w1_ref, b1_ref, w2_ref, b2_ref, w3_ref, b3_ref,
                       out_ref, *, chunk, approx_recip):
    """One batch tile of the Actor MLP in transposed (lane-dense) layout.

    x_ref  : (state_dim, TM)  -- states are columns (lane axis), TM % chunk == 0
    w*_ref : (out, in)        -- PyTorch nn.Linear weight layout (VMEM resident)
    b*_ref : (out, chunk)     -- biases pre-broadcast to the chunk width (resident)
    out_ref: (n_actions, TM)  -- per-column softmax over actions
    """
    mm_dtype = w1_ref.dtype                 # bf16 fast path, f32 exact path
    n_chunks = x_ref.shape[1] // chunk      # static

    # Statically unrolled chunk loop: every slice start is a Python constant,
    # so each x/out access is a zero-cost static view; each chunk's
    # intermediates die at its store, keeping vreg pressure flat.
    for c in range(n_chunks):
        lo = c * chunk
        x = x_ref[:, lo:lo + chunk]                              # (state_dim, chunk)
        h1 = jnp.tanh(
            jnp.dot(w1_ref[...], x, preferred_element_type=jnp.float32)
            + b1_ref[...])
        h2 = jnp.tanh(
            jnp.dot(w2_ref[...], h1.astype(mm_dtype),
                    preferred_element_type=jnp.float32) + b2_ref[...])
        logits = (
            jnp.dot(w3_ref[...], h2.astype(mm_dtype),
                    preferred_element_type=jnp.float32) + b3_ref[...])

        # numerically-stable softmax over the action (sublane) axis, per column
        m = jnp.max(logits, axis=0, keepdims=True)
        e = jnp.exp(logits - m)
        s = jnp.sum(e, axis=0, keepdims=True)
        out_ref[:, lo:lo + chunk] = (
            e * pl.reciprocal(s, approx=approx_recip)).astype(out_ref.dtype)


def _actor_single_block_kernel(x_ref, w1_ref, b1_ref, w2_ref, b2_ref,
                               w3_ref, b3_ref, out_ref, *, softmax_axis):
    """Single-block exact-f32 kernel (faithful nn.Softmax(dim=0) on 2-D input).

    x_ref (state_dim, B); b*_ref (out, 1); out_ref (n_actions, B).
    """
    x = x_ref[...]
    h1 = jnp.tanh(jnp.dot(w1_ref[...], x,
                          preferred_element_type=jnp.float32) + b1_ref[...])
    h2 = jnp.tanh(jnp.dot(w2_ref[...], h1,
                          preferred_element_type=jnp.float32) + b2_ref[...])
    logits = jnp.dot(w3_ref[...], h2,
                     preferred_element_type=jnp.float32) + b3_ref[...]
    m = jnp.max(logits, axis=softmax_axis, keepdims=True)
    e = jnp.exp(logits - m)
    s = jnp.sum(e, axis=softmax_axis, keepdims=True)
    out_ref[...] = e * pl.reciprocal(s, approx=False)


# ---------------------------------------------------------------------------
# Parameters (PyTorch nn.Linear default init + layout: W (out,in), b (out,1))
# ---------------------------------------------------------------------------
def init_actor_params(key, state_dim, n_actions):
    dims = [(state_dim, 128), (128, 64), (64, n_actions)]
    params = []
    for fan_in, fan_out in dims:
        key, kw, kb = jax.random.split(key, 3)
        bound = 1.0 / math.sqrt(fan_in)
        w = jax.random.uniform(kw, (fan_out, fan_in), jnp.float32, -bound, bound)
        b = jax.random.uniform(kb, (fan_out, 1), jnp.float32, -bound, bound)
        params.append((w, b))
    return params


def prepare_actor_params(params, *, chunk=CHUNK, matmul_dtype=jnp.bfloat16):
    """One-time prep for the batched path: cast weights to the MXU dtype and
    pre-broadcast biases to (out, chunk) f32, so no per-call convert ops and
    no per-tile lane broadcasts are paid later."""
    (w1, b1), (w2, b2), (w3, b3) = params
    ws = tuple(jnp.asarray(w, matmul_dtype) for w in (w1, w2, w3))
    bs = tuple(jnp.broadcast_to(jnp.asarray(b, jnp.float32), (b.shape[0], chunk))
               for b in (b1, b2, b3))
    return {"w": ws, "b": bs, "chunk": chunk,
            "dtype": jnp.dtype(matmul_dtype),
            "state_dim": w1.shape[1], "n_actions": w3.shape[0]}


# ---------------------------------------------------------------------------
# Batch-tile sizing
# ---------------------------------------------------------------------------
def _round_up(x, m):
    return ((x + m - 1) // m) * m


def _pick_tm(batch, chunk, max_tm=MAX_TM):
    # Large tiles amortize per-grid-step overhead, but keep >=2 tiles when the
    # batch allows it so the "parallel" grid axis can use both v7x TensorCores.
    tm = _round_up(max(1, -(-batch // 2)), chunk)
    return max(chunk, min(max_tm, tm))


# ---------------------------------------------------------------------------
# High-throughput batched path: many 1-D states, one launch, resident weights
# (equivalent to vmapping the module over rows of `xs`)
# ---------------------------------------------------------------------------
def actor_forward_states(xs, params=None, *, prepared=None, tm=None,
                         chunk=CHUNK, matmul_dtype=jnp.bfloat16):
    if prepared is None:
        prepared = prepare_actor_params(params, chunk=chunk,
                                        matmul_dtype=matmul_dtype)
    chunk = prepared["chunk"]
    w1, w2, w3 = prepared["w"]
    b1, b2, b3 = prepared["b"]
    mm_dtype = prepared["dtype"]
    n_actions = prepared["n_actions"]

    B, state_dim = xs.shape
    if tm is None:
        tm = _pick_tm(B, chunk)
    tm = _round_up(tm, chunk)
    num_tiles = pl.cdiv(B, tm)

    # Lane-dense layout with no zero-padding pass: feed xs.T directly and let
    # Pallas mask the partial last block (columns are independent, tail
    # garbage never touches valid columns and its stores are masked).
    xt = xs.T.astype(mm_dtype)

    exact = mm_dtype == jnp.dtype(jnp.float32)
    kernel = functools.partial(_actor_tile_kernel, chunk=chunk,
                               approx_recip=not exact)

    flops = 2 * B * (state_dim * 128 + 128 * 64 + 64 * n_actions)
    trans = B * (128 + 64 + n_actions)
    bytes_accessed = (
        xt.size * xt.dtype.itemsize
        + sum(a.size * a.dtype.itemsize for a in (w1, b1, w2, b2, w3, b3))
        + n_actions * B * 4)

    def build(single_buffer):
        def resident(shape):
            # Constant block index keeps weights/biases VMEM-resident across
            # grid steps; single buffering avoids the pointless second buffer.
            if single_buffer:
                return pl.BlockSpec(shape, lambda i: (0, 0),
                                    pipeline_mode=pl.Buffered(buffer_count=1))
            return pl.BlockSpec(shape, lambda i: (0, 0))

        return pl.pallas_call(
            kernel,
            out_shape=jax.ShapeDtypeStruct((n_actions, B), jnp.float32),
            grid=(num_tiles,),
            in_specs=[
                pl.BlockSpec((state_dim, tm), lambda i: (0, i)),   # x tiles
                resident(w1.shape), resident(b1.shape),
                resident(w2.shape), resident(b2.shape),
                resident(w3.shape), resident(b3.shape),
            ],
            out_specs=pl.BlockSpec((n_actions, tm), lambda i: (0, i)),
            compiler_params=pltpu.CompilerParams(
                dimension_semantics=("parallel",)),
            cost_estimate=pl.CostEstimate(flops=flops, transcendentals=trans,
                                          bytes_accessed=bytes_accessed),
        )

    if _RESIDENT_SINGLE_BUFFER[0]:
        try:
            out_t = build(True)(xt, w1, b1, w2, b2, w3, b3)
        except Exception:  # jax build without Buffered(1) support -> fall back
            _RESIDENT_SINGLE_BUFFER[0] = False
            out_t = build(False)(xt, w1, b1, w2, b2, w3, b3)
    else:
        out_t = build(False)(xt, w1, b1, w2, b2, w3, b3)

    return out_t.T


# ---------------------------------------------------------------------------
# Faithful forward of the PyTorch module (nn.Softmax(dim=0) semantics)
# ---------------------------------------------------------------------------
def actor_forward(x, params, *, prepared_exact=None):
    (w1, b1), (w2, b2), (w3, b3) = params
    n_actions = w3.shape[0]

    if x.ndim == 1:
        # Softmax(dim=0) == softmax over the action axis for a single state.
        if prepared_exact is None:
            prepared_exact = prepare_actor_params(params,
                                                  matmul_dtype=jnp.float32)
        return actor_forward_states(x[None, :], prepared=prepared_exact)[0]

    # 2-D input: nn.Softmax(dim=0) normalizes over the *batch* axis.
    # Single-block f32 kernel, transposed layout, softmax along the lane axis.
    # TODO(synk): for very large B (>~30k) switch to an online cross-tile
    # max/sum reduction over batch tiles; for now the scoped-VMEM limit is
    # raised so moderately large batches still compile.
    B, state_dim = x.shape
    xt = x.T.astype(jnp.float32)
    kernel = functools.partial(_actor_single_block_kernel, softmax_axis=1)
    vmem = pl.BlockSpec(memory_space=pltpu.MemorySpace.VMEM)
    out_t = pl.pallas_call(
        kernel,
        out_shape=jax.ShapeDtypeStruct((n_actions, B), jnp.float32),
        in_specs=[vmem] * 7,
        out_specs=vmem,
        compiler_params=pltpu.CompilerParams(
            vmem_limit_bytes=64 * 1024 * 1024),
    )(xt, w1, b1, w2, b2, w3, b3)
    return out_t.T


# ---------------------------------------------------------------------------
# Pure-JAX references
# ---------------------------------------------------------------------------
def _reference_single(x, params):
    (w1, b1), (w2, b2), (w3, b3) = params
    h1 = jnp.tanh(w1 @ x + b1[:, 0])
    h2 = jnp.tanh(w2 @ h1 + b2[:, 0])
    logits = w3 @ h2 + b3[:, 0]
    return jax.nn.softmax(logits, axis=0)


def _reference_module_2d(xb, params):
    (w1, b1), (w2, b2), (w3, b3) = params
    h1 = jnp.tanh(xb @ w1.T + b1[:, 0])
    h2 = jnp.tanh(h1 @ w2.T + b2[:, 0])
    logits = h2 @ w3.T + b3[:, 0]
    return jax.nn.softmax(logits, axis=0)   # Softmax(dim=0) over the batch


def _reference_states(xs, params):
    return jax.vmap(lambda x: _reference_single(x, params))(xs)


if __name__ == "__main__":
    state_dim = 32
    n_actions = 8

    key = jax.random.PRNGKey(0)
    key, kp, kx, kb = jax.random.split(key, 4)
    params = init_actor_params(kp, state_dim, n_actions)

    # one-time param prep: bf16 weight cache + chunk-wide bias broadcast
    prepared_bf16 = prepare_actor_params(params)                      # fast path
    prepared_f32 = prepare_actor_params(params, matmul_dtype=jnp.float32)

    # --- faithful 1-D path (typical RL usage: one state vector, f32) --------
    x = jax.random.normal(kx, (state_dim,), jnp.float32)
    out = jax.block_until_ready(actor_forward(x, params,
                                              prepared_exact=prepared_f32))
    ref = _reference_single(x, params)
    assert out.shape == (n_actions,)
    assert jnp.allclose(out, ref, atol=1e-3, rtol=1e-3)
    assert jnp.allclose(jnp.sum(out), 1.0, atol=1e-3)

    # --- faithful 2-D path: Softmax(dim=0) over the batch axis --------------
    xb = jax.random.normal(kb, (2, state_dim), jnp.float32)
    outb = jax.block_until_ready(actor_forward(xb, params))
    refb = _reference_module_2d(xb, params)
    assert outb.shape == (2, n_actions)
    assert jnp.allclose(outb, refb, atol=1e-3, rtol=1e-3)

    # --- batched path: B=300 (2 tiles, masked partial tail block) -----------
    key, kxs = jax.random.split(key)
    B = 300
    xs = jax.random.normal(kxs, (B, state_dim), jnp.float32)
    outs = jax.block_until_ready(actor_forward_states(xs, prepared=prepared_bf16))
    refs = _reference_states(xs, params)
    assert outs.shape == (B, n_actions)
    assert jnp.allclose(outs, refs, atol=3e-2, rtol=0)
    assert jnp.allclose(jnp.sum(outs, axis=-1), 1.0, atol=1e-2)

    # --- batched path: B=1200 (multi-chunk inner loop + masked tail) --------
    key, kxl = jax.random.split(key)
    B2 = 1200
    xl = jax.random.normal(kxl, (B2, state_dim), jnp.float32)
    outl = jax.block_until_ready(actor_forward_states(xl, prepared=prepared_bf16))
    refl = _reference_states(xl, params)
    assert outl.shape == (B2, n_actions)
    assert jnp.allclose(outl, refl, atol=4e-2, rtol=0)
    assert jnp.allclose(jnp.sum(outl, axis=-1), 1.0, atol=1e-2)

    print("KERNEL_OK")
</pallas_src>

<mosaic_0001>
module attributes {stable_mosaic.version = 11 : i64} {
  func.func @_actor_tile_kernel(%arg0: i32, %arg1: memref<32x256xf32, #tpu.memory_space<vmem>>, %arg2: memref<128x32xf32, #tpu.memory_space<vmem>>, %arg3: memref<128x256xf32, #tpu.memory_space<vmem>>, %arg4: memref<64x128xf32, #tpu.memory_space<vmem>>, %arg5: memref<64x256xf32, #tpu.memory_space<vmem>>, %arg6: memref<8x64xf32, #tpu.memory_space<vmem>>, %arg7: memref<8x256xf32, #tpu.memory_space<vmem>>, %arg8: memref<8x256xf32, #tpu.memory_space<vmem>>) attributes {dimension_semantics = [#tpu.dimension_semantics<parallel>], iteration_bounds = array<i64: 1>, scalar_prefetch = 0 : i64, scratch_operands = 0 : i64, tpu.core_type = #tpu.core_type<tc>, window_params = [{transform_indices = @transform_0, window_bounds = array<i64: 32, 256>}, {pipeline_mode = #tpu.pipeline_mode<synchronous>, transform_indices = @transform_1, window_bounds = array<i64: 128, 32>}, {pipeline_mode = #tpu.pipeline_mode<synchronous>, transform_indices = @transform_2, window_bounds = array<i64: 128, 256>}, {pipeline_mode = #tpu.pipeline_mode<synchronous>, transform_indices = @transform_3, window_bounds = array<i64: 64, 128>}, {pipeline_mode = #tpu.pipeline_mode<synchronous>, transform_indices = @transform_4, window_bounds = array<i64: 64, 256>}, {pipeline_mode = #tpu.pipeline_mode<synchronous>, transform_indices = @transform_5, window_bounds = array<i64: 8, 64>}, {pipeline_mode = #tpu.pipeline_mode<synchronous>, transform_indices = @transform_6, window_bounds = array<i64: 8, 256>}, {transform_indices = @transform_7, window_bounds = array<i64: 8, 256>}]} {
    %c0 = arith.constant 0 : index
    %c0_0 = arith.constant 0 : index
    %0 = vector.load %arg1[%c0, %c0_0] : memref<32x256xf32, #tpu.memory_space<vmem>>, vector<32x256xf32>
    %c0_1 = arith.constant 0 : index
    %c0_2 = arith.constant 0 : index
    %1 = vector.load %arg2[%c0_1, %c0_2] : memref<128x32xf32, #tpu.memory_space<vmem>>, vector<128x32xf32>
    %cst = arith.constant dense<0.000000e+00> : vector<128x256xf32>
    %2 = tpu.matmul %1, %0, %cst {dimension_numbers = #tpu.dot_dimension_numbers<[1], [0], [0], [1], [0, 0, 1, 1], [], []>} : vector<128x32xf32>, vector<32x256xf32>, vector<128x256xf32> -> vector<128x256xf32>
    %c0_3 = arith.constant 0 : index
    %c0_4 = arith.constant 0 : index
    %3 = vector.load %arg3[%c0_3, %c0_4] : memref<128x256xf32, #tpu.memory_space<vmem>>, vector<128x256xf32>
    %4 = arith.addf %2, %3 : vector<128x256xf32>
    %5 = math.tanh %4 : vector<128x256xf32>
    %c0_5 = arith.constant 0 : index
    %c0_6 = arith.constant 0 : index
    %6 = vector.load %arg4[%c0_5, %c0_6] : memref<64x128xf32, #tpu.memory_space<vmem>>, vector<64x128xf32>
    %cst_7 = arith.constant dense<0.000000e+00> : vector<64x256xf32>
    %7 = tpu.matmul %6, %5, %cst_7 {dimension_numbers = #tpu.dot_dimension_numbers<[1], [0], [0], [1], [0, 0, 1, 1], [], []>} : vector<64x128xf32>, vector<128x256xf32>, vector<64x256xf32> -> vector<64x256xf32>
    %c0_8 = arith.constant 0 : index
    %c0_9 = arith.constant 0 : index
    %8 = vector.load %arg5[%c0_8, %c0_9] : memref<64x256xf32, #tpu.memory_space<vmem>>, vector<64x256xf32>
    %9 = arith.addf %7, %8 : vector<64x256xf32>
    %10 = math.tanh %9 : vector<64x256xf32>
    %c0_10 = arith.constant 0 : index
    %c0_11 = arith.constant 0 : index
    %11 = vector.load %arg6[%c0_10, %c0_11] : memref<8x64xf32, #tpu.memory_space<vmem>>, vector<8x64xf32>
    %cst_12 = arith.constant dense<0.000000e+00> : vector<8x256xf32>
    %12 = tpu.matmul %11, %10, %cst_12 {dimension_numbers = #tpu.dot_dimension_numbers<[1], [0], [0], [1], [0, 0, 1, 1], [], []>} : vector<8x64xf32>, vector<64x256xf32>, vector<8x256xf32> -> vector<8x256xf32>
    %c0_13 = arith.constant 0 : index
    %c0_14 = arith.constant 0 : index
    %13 = vector.load %arg7[%c0_13, %c0_14] : memref<8x256xf32, #tpu.memory_space<vmem>>, vector<8x256xf32>
    %14 = arith.addf %12, %13 : vector<8x256xf32>
    %cst_15 = arith.constant dense<0xFF800000> : vector<256xf32>
    %15 = vector.multi_reduction <maximumf>, %14, %cst_15 [0] : vector<8x256xf32> to vector<256xf32>
    %16 = vector.shape_cast %15 : vector<256xf32> to vector<1x256xf32>
    %17 = vector.broadcast %16 : vector<1x256xf32> to vector<8x256xf32>
    %18 = arith.subf %14, %17 : vector<8x256xf32>
    %19 = math.exp %18 : vector<8x256xf32>
    %cst_16 = arith.constant dense<0.000000e+00> : vector<256xf32>
    %20 = vector.multi_reduction <add>, %19, %cst_16 [0] : vector<8x256xf32> to vector<256xf32>
    %21 = vector.shape_cast %20 : vector<256xf32> to vector<1x256xf32>
    %22 = tpu.reciprocal %21 : vector<1x256xf32> -> vector<1x256xf32>
    %23 = vector.broadcast %22 : vector<1x256xf32> to vector<8x256xf32>
    %24 = arith.mulf %19, %23 : vector<8x256xf32>
    %c0_17 = arith.constant 0 : index
    %c0_18 = arith.constant 0 : index
    %25 = vector.load %arg8[%c0_17, %c0_18] : memref<8x256xf32, #tpu.memory_space<vmem>>, vector<8x256xf32>
    tpu.vector_store %arg8[%c0_17, %c0_18], %24 {strides = array<i32>} : memref<8x256xf32, #tpu.memory_space<vmem>>, vector<8x256xf32>,
    return
  }
  func.func @transform_0(%arg0: i32) -> (i32, i32) {
    %c0_i32 = arith.constant 0 : i32
    %c0_i32_0 = arith.constant 0 : i32
    return %c0_i32, %arg0 : i32, i32
  }
  func.func @transform_1(%arg0: i32) -> (i32, i32) {
    %c0_i32 = arith.constant 0 : i32
    %c0_i32_0 = arith.constant 0 : i32
    %c0_i32_1 = arith.constant 0 : i32
    return %c0_i32, %c0_i32_0 : i32, i32
  }
  func.func @transform_2(%arg0: i32) -> (i32, i32) {
    %c0_i32 = arith.constant 0 : i32
    %c0_i32_0 = arith.constant 0 : i32
    %c0_i32_1 = arith.constant 0 : i32
    return %c0_i32, %c0_i32_0 : i32, i32
  }
  func.func @transform_3(%arg0: i32) -> (i32, i32) {
    %c0_i32 = arith.constant 0 : i32
    %c0_i32_0 = arith.constant 0 : i32
    %c0_i32_1 = arith.constant 0 : i32
    return %c0_i32, %c0_i32_0 : i32, i32
  }
  func.func @transform_4(%arg0: i32) -> (i32, i32) {
    %c0_i32 = arith.constant 0 : i32
    %c0_i32_0 = arith.constant 0 : i32
    %c0_i32_1 = arith.constant 0 : i32
    return %c0_i32, %c0_i32_0 : i32, i32
  }
  func.func @transform_5(%arg0: i32) -> (i32, i32) {
    %c0_i32 = arith.constant 0 : i32
    %c0_i32_0 = arith.constant 0 : i32
    %c0_i32_1 = arith.constant 0 : i32
    return %c0_i32, %c0_i32_0 : i32, i32
  }
  func.func @transform_6(%arg0: i32) -> (i32, i32) {
    %c0_i32 = arith.constant 0 : i32
    %c0_i32_0 = arith.constant 0 : i32
    %c0_i32_1 = arith.constant 0 : i32
    return %c0_i32, %c0_i32_0 : i32, i32
  }
  func.func @transform_7(%arg0: i32) -> (i32, i32) {
    %c0_i32 = arith.constant 0 : i32
    %c0_i32_0 = arith.constant 0 : i32
    return %c0_i32, %arg0 : i32, i32
  }
}

module attributes {stable_mosaic.version = 11 : i64} {
  func.func @_actor_tile_kernel(%arg0: i32, %arg1: memref<32x256xf32, #tpu.memory_space<vmem>>, %arg2: memref<128x32xf32, #tpu.memory_space<vmem>>, %arg3: memref<128x256xf32, #tpu.memory_space<vmem>>, %arg4: memref<64x128xf32, #tpu.memory_space<vmem>>, %arg5: memref<64x256xf32, #tpu.memory_space<vmem>>, %arg6: memref<8x64xf32, #tpu.memory_space<vmem>>, %arg7: memref<8x256xf32, #tpu.memory_space<vmem>>, %arg8: memref<8x256xf32, #tpu.memory_space<vmem>>) attributes {dimension_semantics = [#tpu.dimension_semantics<parallel>], iteration_bounds = array<i64: 1>, scalar_prefetch = 0 : i64, scratch_operands = 0 : i64, tpu.core_type = #tpu.core_type<tc>, window_params = [{transform_indices = @transform_0, window_bounds = array<i64: 32, 256>}, {pipeline_mode = #tpu.pipeline_mode<synchronous>, transform_indices = @transform_1, window_bounds = array<i64: 128, 32>}, {pipeline_mode = #tpu.pipeline_mode<synchronous>, transform_indices = @transform_2, window_bounds = array<i64: 128, 256>}, {pipeline_mode = #tpu.pipeline_mode<synchronous>, transform_indices = @transform_3, window_bounds = array<i64: 64, 128>}, {pipeline_mode = #tpu.pipeline_mode<synchronous>, transform_indices = @transform_4, window_bounds = array<i64: 64, 256>}, {pipeline_mode = #tpu.pipeline_mode<synchronous>, transform_indices = @transform_5, window_bounds = array<i64: 8, 64>}, {pipeline_mode = #tpu.pipeline_mode<synchronous>, transform_indices = @transform_6, window_bounds = array<i64: 8, 256>}, {transform_indices = @transform_7, window_bounds = array<i64: 8, 256>}]} {
    %c0 = arith.constant 0 : index
    %c0_0 = arith.constant 0 : index
    %0 = vector.load %arg1[%c0, %c0_0] : memref<32x256xf32, #tpu.memory_space<vmem>>, vector<32x256xf32>
    %c0_1 = arith.constant 0 : index
    %c0_2 = arith.constant 0 : index
    %1 = vector.load %arg2[%c0_1, %c0_2] : memref<128x32xf32, #tpu.memory_space<vmem>>, vector<128x32xf32>
    %cst = arith.constant dense<0.000000e+00> : vector<128x256xf32>
    %2 = tpu.matmul %1, %0, %cst {dimension_numbers = #tpu.dot_dimension_numbers<[1], [0], [0], [1], [0, 0, 1, 1], [], []>} : vector<128x32xf32>, vector<32x256xf32>, vector<128x256xf32> -> vector<128x256xf32>
    %c0_3 = arith.constant 0 : index
    %c0_4 = arith.constant 0 : index
    %3 = vector.load %arg3[%c0_3, %c0_4] : memref<128x256xf32, #tpu.memory_space<vmem>>, vector<128x256xf32>
    %4 = arith.addf %2, %3 : vector<128x256xf32>
    %5 = math.tanh %4 : vector<128x256xf32>
    %c0_5 = arith.constant 0 : index
    %c0_6 = arith.constant 0 : index
    %6 = vector.load %arg4[%c0_5, %c0_6] : memref<64x128xf32, #tpu.memory_space<vmem>>, vector<64x128xf32>
    %cst_7 = arith.constant dense<0.000000e+00> : vector<64x256xf32>
    %7 = tpu.matmul %6, %5, %cst_7 {dimension_numbers = #tpu.dot_dimension_numbers<[1], [0], [0], [1], [0, 0, 1, 1], [], []>} : vector<64x128xf32>, vector<128x256xf32>, vector<64x256xf32> -> vector<64x256xf32>
    %c0_8 = arith.constant 0 : index
    %c0_9 = arith.constant 0 : index
    %8 = vector.load %arg5[%c0_8, %c0_9] : memref<64x256xf32, #tpu.memory_space<vmem>>, vector<64x256xf32>
    %9 = arith.addf %7, %8 : vector<64x256xf32>
    %10 = math.tanh %9 : vector<64x256xf32>
    %c0_10 = arith.constant 0 : index
    %c0_11 = arith.constant 0 : index
    %11 = vector.load %arg6[%c0_10, %c0_11] : memref<8x64xf32, #tpu.memory_space<vmem>>, vector<8x64xf32>
    %cst_12 = arith.constant dense<0.000000e+00> : vector<8x256xf32>
    %12 = tpu.matmul %11, %10, %cst_12 {dimension_numbers = #tpu.dot_dimension_numbers<[1], [0], [0], [1], [0, 0, 1, 1], [], []>} : vector<8x64xf32>, vector<64x256xf32>, vector<8x256xf32> -> vector<8x256xf32>
    %c0_13 = arith.constant 0 : index
    %c0_14 = arith.constant 0 : index
    %13 = vector.load %arg7[%c0_13, %c0_14] : memref<8x256xf32, #tpu.memory_space<vmem>>, vector<8x256xf32>
    %14 = arith.addf %12, %13 : vector<8x256xf32>
    %cst_15 = arith.constant dense<0xFF800000> : vector<256xf32>
    %15 = vector.multi_reduction <maximumf>, %14, %cst_15 [0] : vector<8x256xf32> to vector<256xf32>
    %16 = vector.shape_cast %15 : vector<256xf32> to vector<1x256xf32>
    %17 = vector.broadcast %16 : vector<1x256xf32> to vector<8x256xf32>
    %18 = arith.subf %14, %17 : vector<8x256xf32>
    %19 = math.exp %18 : vector<8x256xf32>
    %cst_16 = arith.constant dense<0.000000e+00> : vector<256xf32>
    %20 = vector.multi_reduction <add>, %19, %cst_16 [0] : vector<8x256xf32> to vector<256xf32>
    %21 = vector.shape_cast %20 : vector<256xf32> to vector<1x256xf32>
    %22 = tpu.reciprocal %21 : vector<1x256xf32> -> vector<1x256xf32>
    %23 = vector.broadcast %22 : vector<1x256xf32> to vector<8x256xf32>
    %24 = arith.mulf %19, %23 : vector<8x256xf32>
    %c0_17 = arith.constant 0 : index
    %c0_18 = arith.constant 0 : index
    %25 = vector.load %arg8[%c0_17, %c0_18] : memref<8x256xf32, #tpu.memory_space<vmem>>, vector<8x256xf32>
    tpu.vector_store %arg8[%c0_17, %c0_18], %24 {strides = array<i32>} : memref<8x256xf32, #tpu.memory_space<vmem>>, vector<8x256xf32>,
    return
  }
  func.func @transform_0(%arg0: i32) -> (i32, i32) {
    %c0_i32 = arith.constant 0 : i32
    %c0_i32_0 = arith.constant 0 : i32
    return %c0_i32, %arg0 : i32, i32
  }
  func.func @transform_1(%arg0: i32) -> (i32, i32) {
    %c0_i32 = arith.constant 0 : i32
    %c0_i32_0 = arith.constant 0 : i32
    %c0_i32_1 = arith.constant 0 : i32
    return %c0_i32, %c0_i32_0 : i32, i32
  }
  func.func @transform_2(%arg0: i32) -> (i32, i32) {
    %c0_i32 = arith.constant 0 : i32
    %c0_i32_0 = arith.constant 0 : i32
    %c0_i32_1 = arith.constant 0 : i32
    return %c0_i32, %c0_i32_0 : i32, i32
  }
  func.func @transform_3(%arg0: i32) -> (i32, i32) {
    %c0_i32 = arith.constant 0 : i32
    %c0_i32_0 = arith.constant 0 : i32
    %c0_i32_1 = arith.constant 0 : i32
    return %c0_i32, %c0_i32_0 : i32, i32
  }
  func.func @transform_4(%arg0: i32) -> (i32, i32) {
    %c0_i32 = arith.constant 0 : i32
    %c0_i32_0 = arith.constant 0 : i32
    %c0_i32_1 = arith.constant 0 : i32
    return %c0_i32, %c0_i32_0 : i32, i32
  }
  func.func @transform_5(%arg0: i32) -> (i32, i32) {
    %c0_i32 = arith.constant 0 : i32
    %c0_i32_0 = arith.constant 0 : i32
    %c0_i32_1 = arith.constant 0 : i32
    return %c0_i32, %c0_i32_0 : i32, i32
  }
  func.func @transform_6(%arg0: i32) -> (i32, i32) {
    %c0_i32 = arith.constant 0 : i32
    %c0_i32_0 = arith.constant 0 : i32
    %c0_i32_1 = arith.constant 0 : i32
    return %c0_i32, %c0_i32_0 : i32, i32
  }
  func.func @transform_7(%arg0: i32) -> (i32, i32) {
    %c0_i32 = arith.constant 0 : i32
    %c0_i32_0 = arith.constant 0 : i32
    return %c0_i32, %arg0 : i32, i32
  }
}

</mosaic_0001>

<bundles_post_ra>
// kernel: tpu_custom_call.1
= control target key start
LH: loop header
LB: loop body
LE: loop exit
PB: predicated region body
PF: predicated region fallthrough
CT: control target
= control target key end

     0   :  { %12 = vsyncpa [#allocation4], 0  ;;  %s1157_s0 = inlined_call_operand.vmem [shape: f32[32,1], index: 0, kind: input, shape index: {}]   ;;  %s1158_s1 = inlined_call_operand.vmem [shape: f32[128,32], index: 1, kind: input, shape index: {}]   ;;  %s1159_s2 = inlined_call_operand.hbm [shape: f32[128,256], index: 2, kind: input, shape index: {}]   ;;  %s1160_s3 = inlined_call_operand.vmem [shape: f32[64,128], index: 3, kind: input, shape index: {}]   ;;  %s1161_s4 = inlined_call_operand.vmem [shape: f32[64,256], index: 4, kind: input, shape index: {}]   ;;  %s1162_s5 = inlined_call_operand.hbm [shape: f32[8,64], index: 5, kind: input, shape index: {}]   ;;  %s1163_s6 = inlined_call_operand.hbm [shape: f32[8,256], index: 6, kind: input, shape index: {}]   ;;  %s1164_s7 = inlined_call_operand.vmem [shape: f32[8,1], index: 7, kind: output, shape index: {}]  }
   0x1   :  { %13 = vsyncpa [#allocation6], 0  ;;  %s85_s26 = sshll.u32 %s1162_s5, 4  ;;  %v50_v0 = vld [vmem:[%s1157_s0] sm:$0xff]  ;;  %v52_v1 = vld [vmem:[%s1157_s0 + $0x8] sm:$0xff]  ;;  %s876_s8 = smov [#allocation5]   ;;  %s86_s26 = int_to_ptr.hbm [resolvable:$true] %s85_s26 }
   0x2   :  { %s87_s9 = sshll.u32 %s876_s8, 4  ;;  %51 = vst [vmem:[#allocation2 + $0x28] sm:$0xff] %v50_v0  ;;  %v54_v2 = vld [vmem:[%s1157_s0 + $0x10] sm:$0xff]  ;;  %v56_v3 = vld [vmem:[%s1157_s0 + $0x18] sm:$0xff]  ;;  %s67_s15 = sshll.u32 %s1159_s2, 4  ;;  %s88_s9 = int_to_ptr.vmem [resolvable:$true] %s87_s9  ;;  %s68_s15 = int_to_ptr.hbm [resolvable:$true] %s67_s15 }
   0x3   :  { %53 = vst [vmem:[#allocation2] sm:$0xff] %v52_v1  ;;  %90 = dma.hbm_to_vmem [thread:$0]  %s86_s26, 128, %s88_s9, [#allocation6]  }
   0x4   :  { %55 = vst [vmem:[#allocation2 + $0x30] sm:$0xff] %v54_v2  ;;  %s877_s16 = smov [#allocation3]   ;;  %s878_s18 = smov 256  }
   0x5   :  { %57 = vst [vmem:[#allocation2 + $0x20] sm:$0xff] %v56_v3  ;;  %s69_s17 = sshll.u32 %s877_s16, 4  ;;  %s879_s19 = smov 16   ;;  %s70_s17 = int_to_ptr.vmem [resolvable:$true] %s69_s17 }
   0x6   :  { %75 = dma.hbm_to_vmem [thread:$0]  %s68_s15, 4096, %s70_s17, [#allocation4], %s878_s18, %s878_s18, %s879_s19  }
   0x7   :  { %s96_s0 = sshll.u32 %s1163_s6, 4  ;;  %s880_s22 = smov [#allocation7]   ;;  %s97_s0 = int_to_ptr.hbm [resolvable:$true] %s96_s0 }
   0x8   :  { %s98_s23 = sshll.u32 %s880_s22, 4  ;;  %s99_s23 = int_to_ptr.vmem [resolvable:$true] %s98_s23 }
   0x9   :  { %101 = dma.hbm_to_vmem [thread:$0]  %s97_s0, 256, %s99_s23, [#allocation6]  }
   0xa   :  { %872 = dma.done.wait [#allocation4], 4096  }
   0xb   :  { %873 = vsyncadd [#allocation4], 4294963200 }
   0xc   :  { %874 = dma.done.wait [#allocation6], 384  }
   0xd   :  { %875 = vsyncadd [#allocation6], 4294966912  ;;  %v122_v4 = vld [vmem:[#allocation2 + $0x20] sm:$0xff]  ;;  %v123_v5 = vld [vmem:[#allocation2 + $0x38] sm:$0xff]  ;;  %vm172_vm0 = vcmask 261120   ;;  %vm508_vm1 = vcmask 523264  }
   0xe   :  { %v120_v6 = vld [vmem:[#allocation2 + $0x30] sm:$0xff]  ;;  %233 = vmatpush.msra.mxu0 %v122_v4  ;;  %298 = vmatpush.msra.mxu1 %v123_v5  ;;  %v121_v7 = vld [vmem:[#allocation2 + $0x18] sm:$0xff]  ;;  %v118_v8 = vld [vmem:[#allocation2] sm:$0xff] }
   0xf   :  { %v119_v9 = vld [vmem:[#allocation2 + $0x8] sm:$0xff]  ;;  %v117_v11 = vld [vmem:[#allocation2 + $0x10] sm:$0xff]  ;;  %v124_v12 = vld [vmem:[%s1158_s1] sm:$0xff] }
  0x10   :  { %234 = vmatpush.msra.mxu0 %v120_v6  ;;  %299 = vmatpush.msra.mxu1 %v121_v7  ;;  %v116_v10 = vld [vmem:[#allocation2 + $0x28] sm:$0xff]  ;;  %v126_v14 = vld [vmem:[%s1158_s1 + $0x10] sm:$0xff]  ;;  %v127_v15 = vld [vmem:[%s1158_s1 + $0x18] sm:$0xff] }
  0x11   :  { %v125_v13 = vld [vmem:[%s1158_s1 + $0x8] sm:$0xff]  ;;  %v128_v16 = vld [vmem:[%s1158_s1 + $0x20] sm:$0xff]  ;;  %v130_v18 = vld [vmem:[%s1158_s1 + $0x30] sm:$0xff] }
  0x12   :  { %235 = vmatpush.msra.mxu0 %v118_v8  ;;  %300 = vmatpush.msra.mxu1 %v119_v9  ;;  %v129_v17 = vld [vmem:[%s1158_s1 + $0x28] sm:$0xff]  ;;  %v131_v19 = vld [vmem:[%s1158_s1 + $0x38] sm:$0xff]  ;;  %v132_v20 = vld [vmem:[%s1158_s1 + $0x40] sm:$0xff] }
  0x13   :  { %v133_v21 = vld [vmem:[%s1158_s1 + $0x48] sm:$0xff]  ;;  %v134_v22 = vld [vmem:[%s1158_s1 + $0x50] sm:$0xff]  ;;  %v135_v23 = vld [vmem:[%s1158_s1 + $0x58] sm:$0xff] }
  0x14   :  { %236 = vmatpush.msra.mxu0 %v116_v10  ;;  %301 = vmatpush.msra.mxu1 %v117_v11  ;;  %v136_v24 = vld [vmem:[%s1158_s1 + $0x60] sm:$0xff]  ;;  %v137_v25 = vld [vmem:[%s1158_s1 + $0x68] sm:$0xff]  ;;  %v138_v26 = vld [vmem:[%s1158_s1 + $0x70] sm:$0xff] }
  0x15   :  { %661 = vmatmul.msk.f32.vlgmr.msra.gmra.mxu0 %vm172_vm0, %v124_v12  ;;  %677 = vmatmul.msk.f32.vlgmr.msra.gmra.mxu1 %vm172_vm0, %v124_v12  ;;  %v139_v27 = vld [vmem:[%s1158_s1 + $0x78] sm:$0xff]  ;;  %v169_v58 = vld [vmem:[#allocation3 + $0xe8] sm:$0xff]  ;;  %v168_v59 = vld [vmem:[#allocation3 + $0xe0] sm:$0xff] }
  0x16   :  { %v170_v61 = vld [vmem:[#allocation3 + $0xf0] sm:$0xff]  ;;  %v171_v62 = vld [vmem:[#allocation3 + $0xf8] sm:$0xff]  ;;  %v165_v3 = vld [vmem:[#allocation3 + $0xc8] sm:$0xff] }
  0x17   :  { %v167_v63 = vld [vmem:[#allocation3 + $0xd8] sm:$0xff]  ;;  %v166_v0 = vld [vmem:[#allocation3 + $0xd0] sm:$0xff]  ;;  %v164_v7 = vld [vmem:[#allocation3 + $0xc0] sm:$0xff] }
  0x18   :  { %v163_v9 = vld [vmem:[#allocation3 + $0xb8] sm:$0xff]  ;;  %v162_v11 = vld [vmem:[#allocation3 + $0xb0] sm:$0xff] }
  0x1d   :  { %662 = vmatmul.msk.f32.gmra.mxu0 %vm172_vm0, %v125_v13  ;;  %678 = vmatmul.msk.f32.gmra.mxu1 %vm172_vm0, %v125_v13  ;;  %v161_v13 = vld [vmem:[#allocation3 + $0xa8] sm:$0xff] }
  0x25   :  { %663 = vmatmul.msk.f32.gmra.mxu0 %vm172_vm0, %v126_v14  ;;  %679 = vmatmul.msk.f32.gmra.mxu1 %vm172_vm0, %v126_v14 }
  0x2d   :  { %664 = vmatmul.msk.f32.gmra.mxu0 %vm172_vm0, %v127_v15  ;;  %680 = vmatmul.msk.f32.gmra.mxu1 %vm172_vm0, %v127_v15  ;;  %v160_v15 = vld [vmem:[#allocation3 + $0xa0] sm:$0xff] }
  0x35   :  { %665 = vmatmul.msk.f32.gmra.mxu0 %vm172_vm0, %v128_v16  ;;  %681 = vmatmul.msk.f32.gmra.mxu1 %vm172_vm0, %v128_v16 }
  0x3d   :  { %666 = vmatmul.msk.f32.gmra.mxu0 %vm172_vm0, %v129_v17  ;;  %682 = vmatmul.msk.f32.gmra.mxu1 %vm172_vm0, %v129_v17 }
  0x45   :  { %667 = vmatmul.msk.f32.gmra.mxu0 %vm172_vm0, %v130_v18  ;;  %683 = vmatmul.msk.f32.gmra.mxu1 %vm172_vm0, %v130_v18 }
  0x4d   :  { %668 = vmatmul.msk.f32.gmra.mxu0 %vm172_vm0, %v131_v19  ;;  %684 = vmatmul.msk.f32.gmra.mxu1 %vm172_vm0, %v131_v19  ;;  %v158_v19 = vld [vmem:[#allocation3 + $0x90] sm:$0xff] }
  0x55   :  { %669 = vmatmul.msk.f32.gmra.mxu0 %vm172_vm0, %v132_v20  ;;  %685 = vmatmul.msk.f32.gmra.mxu1 %vm172_vm0, %v132_v20 }
  0x5d   :  { %670 = vmatmul.msk.f32.gmra.mxu0 %vm172_vm0, %v133_v21  ;;  %686 = vmatmul.msk.f32.gmra.mxu1 %vm172_vm0, %v133_v21 }
  0x65   :  { %671 = vmatmul.msk.f32.gmra.mxu0 %vm172_vm0, %v134_v22  ;;  %687 = vmatmul.msk.f32.gmra.mxu1 %vm172_vm0, %v134_v22  ;;  %v159_v22 = vld [vmem:[#allocation3 + $0x98] sm:$0xff] }
  0x6d   :  { %672 = vmatmul.msk.f32.gmra.mxu0 %vm172_vm0, %v135_v23  ;;  %688 = vmatmul.msk.f32.gmra.mxu1 %vm172_vm0, %v135_v23 }
  0x75   :  { %673 = vmatmul.msk.f32.gmra.mxu0 %vm172_vm0, %v136_v24  ;;  %689 = vmatmul.msk.f32.gmra.mxu1 %vm172_vm0, %v136_v24 }
  0x7d   :  { %674 = vmatmul.msk.f32.gmra.mxu0 %vm172_vm0, %v137_v25  ;;  %690 = vmatmul.msk.f32.gmra.mxu1 %vm172_vm0, %v137_v25  ;;  %v156_v25 = vld [vmem:[#allocation3 + $0x80] sm:$0xff] }
  0x85   :  { %675 = vmatmul.msk.f32.gmra.mxu0 %vm172_vm0, %v138_v26  ;;  %691 = vmatmul.msk.f32.gmra.mxu1 %vm172_vm0, %v138_v26 }
  0x8d   :  { %676 = vmatmul.msk.f32.gmra.mxu0 %vm172_vm0, %v139_v27  ;;  %692 = vmatmul.msk.f32.gmra.mxu1 %vm172_vm0, %v139_v27  ;;  %v157_v27 = vld [vmem:[#allocation3 + $0x88] sm:$0xff] }
  0x92   :  { %v1022_v28 = vpop.f32.mrf.mxu0  ;;  %v1024_v29 = vpop.f32.mrf.mxu1 }
  0x9a   :  { %v1026_v30 = vpop.f32.mrf.mxu0  ;;  %v1028_v31 = vpop.f32.mrf.mxu1 }
  0xa2   :  { %v1030_v32 = vpop.f32.mrf.mxu0  ;;  %v1032_v33 = vpop.f32.mrf.mxu1 }
  0xaa   :  { %v1034_v34 = vpop.f32.mrf.mxu0  ;;  %v1036_v35 = vpop.f32.mrf.mxu1 }
  0xb2   :  { %v1038_v36 = vpop.f32.mrf.mxu0  ;;  %v1040_v37 = vpop.f32.mrf.mxu1 }
  0xba   :  { %v1042_v38 = vpop.f32.mrf.mxu0  ;;  %v1044_v39 = vpop.f32.mrf.mxu1 }
  0xc2   :  { %v1046_v40 = vpop.f32.mrf.mxu0  ;;  %v1048_v41 = vpop.f32.mrf.mxu1 }
  0xca   :  { %v1050_v42 = vpop.f32.mrf.mxu0  ;;  %v1052_v43 = vpop.f32.mrf.mxu1 }
  0xd2   :  { %v1054_v44 = vpop.f32.mrf.mxu0  ;;  %v1056_v45 = vpop.f32.mrf.mxu1 }
  0xda   :  { %v265_v46 = vpop.f32.mrf.mxu0  ;;  %v330_v47 = vpop.f32.mrf.mxu1 }
  0xe2   :  { %v268_v48 = vpop.f32.mrf.mxu0  ;;  %v333_v49 = vpop.f32.mrf.mxu1 }
  0xe3   :  { %v334_v20 = vadd.f32 %v333_v49, %v161_v13  ;;  %v269_v23 = vadd.f32 %v268_v48, %v160_v15  ;;  %v143_v13 = vld [vmem:[#allocation3 + $0x18] sm:$0xff]  ;;  %v140_v15 = vld [vmem:[#allocation3] sm:$0xff] }
  0xea   :  { %v271_v50 = vpop.f32.mrf.mxu0  ;;  %v336_v51 = vpop.f32.mrf.mxu1 }
  0xeb   :  { %v337_v16 = vadd.f32 %v336_v51, %v163_v9  ;;  %v272_v17 = vadd.f32 %v271_v50, %v162_v11  ;;  %v154_v50 = vld [vmem:[#allocation3 + $0x70] sm:$0xff]  ;;  %v145_v9 = vld [vmem:[#allocation3 + $0x28] sm:$0xff] }
  0xec   :  { %v142_v11 = vld [vmem:[#allocation3 + $0x10] sm:$0xff] }
  0xf2   :  { %v274_v52 = vpop.f32.mrf.mxu0  ;;  %v339_v53 = vpop.f32.mrf.mxu1 }
  0xf3   :  { %v340_v12 = vadd.f32 %v339_v53, %v165_v3  ;;  %v275_v14 = vadd.f32 %v274_v52, %v164_v7  ;;  %v266_v52 = vadd.f32 %v265_v46, %v158_v19  ;;  %v331_v53 = vadd.f32 %v330_v47, %v159_v22  ;;  %v153_v46 = vld [vmem:[#allocation3 + $0x68] sm:$0xff]  ;;  %v144_v7 = vld [vmem:[#allocation3 + $0x20] sm:$0xff] }
  0xf4   :  { %v307_v19 = vadd.f32 %v1028_v31, %v143_v13 }
  0xfa   :  { %v277_v54 = vpop.f32.mrf.mxu0  ;;  %v342_v55 = vpop.f32.mrf.mxu1 }
  0xfb   :  { %v343_v8 = vadd.f32 %v342_v55, %v167_v63  ;;  %v278_v10 = vadd.f32 %v277_v54, %v166_v0  ;;  %v155_v54 = vld [vmem:[#allocation3 + $0x78] sm:$0xff]  ;;  %v263_v55 = vadd.f32 %v1054_v44, %v156_v25  ;;  %v148_v0 = vld [vmem:[#allocation3 + $0x40] sm:$0xff] }
 0x102   :  { %v280_v56 = vpop.f32.mrf.mxu0  ;;  %v345_v57 = vpop.f32.mrf.mxu1 }
 0x103   :  { %v346_v60 = vadd.f32 %v345_v57, %v169_v58  ;;  %v281_v4 = vadd.f32 %v280_v56, %v168_v59  ;;  %v152_v56 = vld [vmem:[#allocation3 + $0x60] sm:$0xff]  ;;  %v328_v57 = vadd.f32 %v1056_v45, %v157_v27  ;;  %v260_v59 = vadd.f32 %v1050_v42, %v154_v50  ;;  %v385_v50 = vld [vmem:[%s1160_s3 + $0x10] sm:$0xff] }
 0x104   :  { %v257_v63 = vadd.f32 %v1046_v40, %v152_v56 }
 0x105   :  { %700 = vtanh.f32 %v346_v60  ;;  %v150_v60 = vld [vmem:[#allocation3 + $0x50] sm:$0xff] }
 0x106   :  { %v254_v3 = vadd.f32 %v1042_v38, %v150_v60 }
 0x10a   :  { %v283_v1 = vpop.f32.mrf.mxu0  ;;  %v348_v2 = vpop.f32.mrf.mxu1 }
 0x10b   :  { %v284_v5 = vadd.f32 %v283_v1, %v170_v61  ;;  %v349_v6 = vadd.f32 %v348_v2, %v171_v62  ;;  %v701_v18 = vpop.eup %700  ;;  %v325_v61 = vadd.f32 %v1052_v43, %v155_v54  ;;  %v151_v62 = vld [vmem:[#allocation3 + $0x58] sm:$0xff]  ;;  %v322_v1 = vadd.f32 %v1048_v41, %v153_v46  ;;  %v149_v2 = vld [vmem:[#allocation3 + $0x48] sm:$0xff]  ;;  %v146_v43 = vld [vmem:[#allocation3 + $0x30] sm:$0xff] }
 0x10c   :  { %v388_v54 = vld [vmem:[%s1160_s3 + $0x28] sm:$0xff] }
 0x10d   :  { %702 = vtanh.f32 %v284_v5  ;;  %v147_v5 = vld [vmem:[#allocation3 + $0x38] sm:$0xff] }
 0x10e   :  { %704 = vtanh.f32 %v349_v6  ;;  %v251_v6 = vadd.f32 %v1038_v36, %v148_v0 }
 0x10f   :  { %706 = vtanh.f32 %v281_v4  ;;  %v319_v4 = vadd.f32 %v1044_v39, %v151_v62 }
 0x110   :  { %708 = vtanh.f32 %v343_v8  ;;  %v316_v8 = vadd.f32 %v1040_v37, %v149_v2  ;;  %v403_v2 = vld [vmem:[%s1161_s4 + $0x60] sm:$0xff] }
 0x111   :  { %710 = vtanh.f32 %v278_v10  ;;  %v248_v10 = vadd.f32 %v1034_v34, %v146_v43  ;;  %v405_v43 = vld [vmem:[%s1161_s4 + $0x70] sm:$0xff] }
 0x112   :  { %712 = vtanh.f32 %v340_v12  ;;  %v313_v12 = vadd.f32 %v1036_v35, %v147_v5  ;;  %v401_v5 = vld [vmem:[%s1161_s4 + $0x50] sm:$0xff] }
 0x113   :  { %v703_v21 = vpop.eup %702  ;;  %714 = vtanh.f32 %v275_v14  ;;  %v245_v14 = vadd.f32 %v1030_v32, %v144_v7 }
 0x114   :  { %v705_v24 = vpop.eup %704  ;;  %716 = vtanh.f32 %v337_v16  ;;  %407 = vmatpush.msra.mxu2 %v703_v21  ;;  %v310_v16 = vadd.f32 %v1032_v33, %v145_v9  ;;  %v399_v9 = vld [vmem:[%s1161_s4 + $0x40] sm:$0xff] }
 0x115   :  { %v707_v26 = vpop.eup %706  ;;  %718 = vtanh.f32 %v272_v17  ;;  %448 = vmatpush.msra.mxu3 %v705_v24  ;;  %v141_v17 = vld [vmem:[#allocation3 + $0x8] sm:$0xff] }
 0x116   :  { %v709_v51 = vpop.eup %708  ;;  %720 = vtanh.f32 %v334_v20  ;;  %408 = vmatpush.msra.mxu2 %v707_v26  ;;  %v239_v20 = vadd.f32 %v1022_v28, %v140_v15  ;;  %v304_v33 = vadd.f32 %v1024_v29, %v141_v17  ;;  %v383_v26 = vld [vmem:[%s1160_s3] sm:$0xff] }
 0x117   :  { %v711_v49 = vpop.eup %710  ;;  %722 = vtanh.f32 %v269_v23  ;;  %449 = vmatpush.msra.mxu3 %v701_v18  ;;  %v242_v18 = vadd.f32 %v1026_v30, %v142_v11  ;;  %v398_v11 = vld [vmem:[%s1161_s4 + $0x38] sm:$0xff]  ;;  %v395_v15 = vld [vmem:[%s1161_s4 + $0x20] sm:$0xff] }
 0x118   :  { %v713_v48 = vpop.eup %712  ;;  %409 = vmatpush.msra.mxu2 %v711_v49  ;;  %724 = vtanh.f32 %v266_v52  ;;  %v387_v49 = vld [vmem:[%s1160_s3 + $0x20] sm:$0xff] }
 0x119   :  { %v715_v58 = vpop.eup %714  ;;  %450 = vmatpush.msra.mxu3 %v709_v51  ;;  %726 = vtanh.f32 %v331_v53  ;;  %v384_v51 = vld [vmem:[%s1160_s3 + $0x8] sm:$0xff]  ;;  %v386_v53 = vld [vmem:[%s1160_s3 + $0x18] sm:$0xff] }
 0x11a   :  { %v717_v47 = vpop.eup %716  ;;  %410 = vmatpush.msra.mxu2 %v715_v58  ;;  %728 = vtanh.f32 %v263_v55  ;;  %v389_v55 = vld [vmem:[%s1160_s3 + $0x30] sm:$0xff] }
 0x11b   :  { %v719_v44 = vpop.eup %718  ;;  %451 = vmatpush.msra.mxu3 %v713_v48  ;;  %730 = vtanh.f32 %v328_v57  ;;  %v390_v48 = vld [vmem:[%s1160_s3 + $0x38] sm:$0xff] }
 0x11c   :  { %v721_v45 = vpop.eup %720  ;;  %411 = vmatpush.msra.mxu2 %v719_v44  ;;  %732 = vtanh.f32 %v260_v59 }
 0x11d   :  { %v723_v42 = vpop.eup %722  ;;  %452 = vmatpush.msra.mxu3 %v717_v47  ;;  %734 = vtanh.f32 %v325_v61 }
 0x11e   :  { %412 = vmatpush.msra.mxu2 %v723_v42  ;;  %v725_v40 = vpop.eup %724  ;;  %736 = vtanh.f32 %v257_v63  ;;  %v404_v42 = vld [vmem:[%s1161_s4 + $0x68] sm:$0xff] }
 0x11f   :  { %453 = vmatpush.msra.mxu3 %v721_v45  ;;  %v727_v41 = vpop.eup %726  ;;  %738 = vtanh.f32 %v322_v1 }
 0x120   :  { %413 = vmatpush.msra.mxu2 %v725_v40  ;;  %v729_v38 = vpop.eup %728  ;;  %740 = vtanh.f32 %v254_v3  ;;  %v406_v40 = vld [vmem:[%s1161_s4 + $0x78] sm:$0xff] }
 0x121   :  { %454 = vmatpush.msra.mxu3 %v727_v41  ;;  %v731_v39 = vpop.eup %730  ;;  %742 = vtanh.f32 %v319_v4  ;;  %v402_v4 = vld [vmem:[%s1161_s4 + $0x58] sm:$0xff]  ;;  %v400_v41 = vld [vmem:[%s1161_s4 + $0x48] sm:$0xff] }
 0x122   :  { %414 = vmatpush.msra.mxu2 %v729_v38  ;;  %v733_v36 = vpop.eup %732  ;;  %744 = vtanh.f32 %v251_v6 }
 0x123   :  { %455 = vmatpush.msra.mxu3 %v731_v39  ;;  %v735_v37 = vpop.eup %734  ;;  %746 = vtanh.f32 %v316_v8 }
 0x124   :  { %415 = vmatpush.msra.mxu2 %v733_v36  ;;  %v737_v34 = vpop.eup %736  ;;  %748 = vtanh.f32 %v248_v10  ;;  %v397_v36 = vld [vmem:[%s1161_s4 + $0x30] sm:$0xff] }
 0x125   :  { %456 = vmatpush.msra.mxu3 %v735_v37  ;;  %v739_v35 = vpop.eup %738  ;;  %750 = vtanh.f32 %v313_v12 }
 0x126   :  { %416 = vmatpush.msra.mxu2 %v737_v34  ;;  %v741_v32 = vpop.eup %740  ;;  %752 = vtanh.f32 %v245_v14  ;;  %v396_v14 = vld [vmem:[%s1161_s4 + $0x28] sm:$0xff] }
 0x127   :  { %457 = vmatpush.msra.mxu3 %v739_v35  ;;  %v743_v21 = vpop.eup %742  ;;  %754 = vtanh.f32 %v310_v16 }
 0x128   :  { %417 = vmatpush.msra.mxu2 %v741_v32  ;;  %v745_v22 = vpop.eup %744  ;;  %756 = vtanh.f32 %v242_v18  ;;  %v393_v18 = vld [vmem:[%s1161_s4 + $0x10] sm:$0xff]  ;;  %v394_v32 = vld [vmem:[%s1161_s4 + $0x18] sm:$0xff] }
 0x129   :  { %458 = vmatpush.msra.mxu3 %v743_v21  ;;  %v747_v30 = vpop.eup %746  ;;  %758 = vtanh.f32 %v307_v19 }
 0x12a   :  { %418 = vmatpush.msra.mxu2 %v745_v22  ;;  %v749_v23 = vpop.eup %748  ;;  %760 = vtanh.f32 %v239_v20 }
 0x12b   :  { %459 = vmatpush.msra.mxu3 %v747_v30  ;;  %v751_v31 = vpop.eup %750  ;;  %762 = vtanh.f32 %v304_v33  ;;  %v391_v33 = vld [vmem:[%s1161_s4] sm:$0xff]  ;;  %v392_v30 = vld [vmem:[%s1161_s4 + $0x8] sm:$0xff] }
 0x12c   :  { %419 = vmatpush.msra.mxu2 %v749_v23  ;;  %v753_v28 = vpop.eup %752 }
 0x12d   :  { %460 = vmatpush.msra.mxu3 %v751_v31  ;;  %v755_v24 = vpop.eup %754 }
 0x12e   :  { %420 = vmatpush.msra.mxu2 %v753_v28  ;;  %v757_v25 = vpop.eup %756 }
 0x12f   :  { %461 = vmatpush.msra.mxu3 %v755_v24  ;;  %v759_v29 = vpop.eup %758 }
 0x130   :  { %421 = vmatpush.msra.mxu2 %v757_v25  ;;  %v761_v27 = vpop.eup %760 }
 0x131   :  { %462 = vmatpush.msra.mxu3 %v759_v29  ;;  %v763_v52 = vpop.eup %762 }
 0x132   :  { %422 = vmatpush.msra.mxu2 %v761_v27 }
 0x133   :  { %463 = vmatpush.msra.mxu3 %v763_v52  ;;  %423 = vmatmul.f32.vlgmr.msra.gmra.mxu2 %v383_v26 }
 0x134   :  { %464 = vmatmul.f32.vlgmr.msra.gmra.mxu3 %v383_v26 }
 0x13b   :  { %426 = vmatmul.f32.gmra.mxu2 %v384_v51 }
 0x13c   :  { %467 = vmatmul.f32.gmra.mxu3 %v384_v51 }
 0x143   :  { %429 = vmatmul.f32.gmra.mxu2 %v385_v50 }
 0x144   :  { %470 = vmatmul.f32.gmra.mxu3 %v385_v50 }
 0x14b   :  { %432 = vmatmul.f32.gmra.mxu2 %v386_v53 }
 0x14c   :  { %473 = vmatmul.f32.gmra.mxu3 %v386_v53 }
 0x153   :  { %435 = vmatmul.f32.gmra.mxu2 %v387_v49 }
 0x154   :  { %476 = vmatmul.f32.gmra.mxu3 %v387_v49 }
 0x15b   :  { %438 = vmatmul.f32.gmra.mxu2 %v388_v54 }
 0x15c   :  { %479 = vmatmul.f32.gmra.mxu3 %v388_v54 }
 0x163   :  { %441 = vmatmul.f32.gmra.mxu2 %v389_v55 }
 0x164   :  { %482 = vmatmul.f32.gmra.mxu3 %v389_v55  ;;  %v505_v55 = vld [vmem:[#allocation5] sm:$0xff] }
 0x16b   :  { %444 = vmatmul.f32.gmra.mxu2 %v390_v48 }
 0x16c   :  { %485 = vmatmul.f32.gmra.mxu3 %v390_v48 }
 0x1b6   :  { %v1100_v56 = vpop.f32.mrf.mxu2 }
 0x1b7   :  { %v1102_v57 = vpop.f32.mrf.mxu3  ;;  %v425_v25 = vadd.f32 %v1100_v56, %v391_v33 }
 0x1b8   :  { %v466_v26 = vadd.f32 %v1102_v57, %v392_v30  ;;  %v506_v57 = vld [vmem:[#allocation7] sm:$0xff] }
 0x1be   :  { %v427_v58 = vpop.f32.mrf.mxu2 }
 0x1bf   :  { %v468_v46 = vpop.f32.mrf.mxu3  ;;  %v428_v23 = vadd.f32 %v427_v58, %v393_v18 }
 0x1c0   :  { %v469_v28 = vadd.f32 %v468_v46, %v394_v32 }
 0x1c6   :  { %v430_v59 = vpop.f32.mrf.mxu2 }
 0x1c7   :  { %v471_v47 = vpop.f32.mrf.mxu3  ;;  %v431_v20 = vadd.f32 %v430_v59, %v395_v15 }
 0x1c8   :  { %v472_v35 = vadd.f32 %v471_v47, %v396_v14 }
 0x1ce   :  { %v433_v60 = vpop.f32.mrf.mxu2 }
 0x1cf   :  { %v474_v61 = vpop.f32.mrf.mxu3  ;;  %v434_v34 = vadd.f32 %v433_v60, %v397_v36 }
 0x1d0   :  { %v475_v16 = vadd.f32 %v474_v61, %v398_v11 }
 0x1d6   :  { %v436_v44 = vpop.f32.mrf.mxu2 }
 0x1d7   :  { %v477_v62 = vpop.f32.mrf.mxu3  ;;  %v437_v37 = vadd.f32 %v436_v44, %v399_v9 }
 0x1d8   :  { %v478_v13 = vadd.f32 %v477_v62, %v400_v41 }
 0x1de   :  { %v439_v63 = vpop.f32.mrf.mxu2 }
 0x1df   :  { %v480_v45 = vpop.f32.mrf.mxu3  ;;  %v440_v12 = vadd.f32 %v439_v63, %v401_v5 }
 0x1e0   :  { %v481_v10 = vadd.f32 %v480_v45, %v402_v4 }
 0x1e6   :  { %v442_v0 = vpop.f32.mrf.mxu2 }
 0x1e7   :  { %v483_v1 = vpop.f32.mrf.mxu3  ;;  %v443_v7 = vadd.f32 %v442_v0, %v403_v2 }
 0x1e8   :  { %v484_v3 = vadd.f32 %v483_v1, %v404_v42 }
 0x1ea   :  { %764 = vtanh.f32 %v484_v3 }
 0x1ee   :  { %v445_v6 = vpop.f32.mrf.mxu2 }
 0x1ef   :  { %v446_v8 = vadd.f32 %v445_v6, %v405_v43  ;;  %v486_v38 = vpop.f32.mrf.mxu3 }
 0x1f0   :  { %v487_v39 = vadd.f32 %v486_v38, %v406_v40  ;;  %v765_v17 = vpop.eup %764 }
 0x1f1   :  { %766 = vtanh.f32 %v446_v8 }
 0x1f2   :  { %768 = vtanh.f32 %v487_v39 }
 0x1f3   :  { %770 = vtanh.f32 %v443_v7 }
 0x1f4   :  { %772 = vtanh.f32 %v481_v10 }
 0x1f5   :  { %774 = vtanh.f32 %v440_v12 }
 0x1f6   :  { %776 = vtanh.f32 %v478_v13 }
 0x1f7   :  { %v767_v19 = vpop.eup %766  ;;  %778 = vtanh.f32 %v437_v37 }
 0x1f8   :  { %v769_v21 = vpop.eup %768  ;;  %780 = vtanh.f32 %v475_v16  ;;  %520 = vmatpush.msrb.mxu2 %v767_v19 }
 0x1f9   :  { %v771_v22 = vpop.eup %770  ;;  %782 = vtanh.f32 %v434_v34  ;;  %540 = vmatpush.msrb.mxu3 %v769_v21 }
 0x1fa   :  { %v773_v31 = vpop.eup %772  ;;  %784 = vtanh.f32 %v472_v35  ;;  %521 = vmatpush.msrb.mxu2 %v771_v22 }
 0x1fb   :  { %v775_v24 = vpop.eup %774  ;;  %786 = vtanh.f32 %v431_v20  ;;  %541 = vmatpush.msrb.mxu3 %v765_v17 }
 0x1fc   :  { %v777_v29 = vpop.eup %776  ;;  %522 = vmatpush.msrb.mxu2 %v775_v24  ;;  %788 = vtanh.f32 %v428_v23 }
 0x1fd   :  { %v779_v27 = vpop.eup %778  ;;  %542 = vmatpush.msrb.mxu3 %v773_v31  ;;  %790 = vtanh.f32 %v469_v28 }
 0x1fe   :  { %v781_v52 = vpop.eup %780  ;;  %523 = vmatpush.msrb.mxu2 %v779_v27  ;;  %792 = vtanh.f32 %v425_v25 }
 0x1ff   :  { %v783_v51 = vpop.eup %782  ;;  %543 = vmatpush.msrb.mxu3 %v777_v29  ;;  %794 = vtanh.f32 %v466_v26 }
 0x200   :  { %v785_v50 = vpop.eup %784  ;;  %524 = vmatpush.msrb.mxu2 %v783_v51 }
 0x201   :  { %v787_v53 = vpop.eup %786  ;;  %544 = vmatpush.msrb.mxu3 %v781_v52 }
 0x202   :  { %525 = vmatpush.msrb.mxu2 %v787_v53  ;;  %v789_v49 = vpop.eup %788 }
 0x203   :  { %545 = vmatpush.msrb.mxu3 %v785_v50  ;;  %v791_v54 = vpop.eup %790 }
 0x204   :  { %526 = vmatpush.msrb.mxu2 %v789_v49  ;;  %v793_v48 = vpop.eup %792 }
 0x205   :  { %546 = vmatpush.msrb.mxu3 %v791_v54  ;;  %v795_v56 = vpop.eup %794 }
 0x206   :  { %527 = vmatpush.msrb.mxu2 %v793_v48 }
 0x207   :  { %547 = vmatpush.msrb.mxu3 %v795_v56  ;;  %693 = vmatmul.msk.f32.vlgmr.msrb.gmra.mxu2 %vm508_vm1, %v505_v55 }
 0x208   :  { %694 = vmatmul.msk.f32.vlgmr.msrb.gmra.mxu3 %vm508_vm1, %v505_v55 }
 0x28a   :  { %v529_v58 = vpop.f32.mrf.mxu2 }
 0x28b   :  { %v530_v46 = vadd.f32 %v529_v58, %v506_v57  ;;  %v549_v59 = vpop.f32.mrf.mxu3 }
 0x28d   :  { %v552_v47 = vrot.slane %v530_v46, 4 }
 0x28f   :  { %v553_v60 = vmax.f32 %v530_v46, %v552_v47 }
 0x291   :  { %v554_v61 = vrot.slane %v553_v60, 2 }
 0x293   :  { %v555_v44 = vmax.f32 %v553_v60, %v554_v61 }
 0x295   :  { %v556_v62 = vrot.slane %v555_v44, 1 }
 0x297   :  { %v557_v63 = vmax.f32 %v555_v44, %v556_v62 }
 0x299   :  { %v564_v45 = vsub.f32 %v530_v46, %v557_v63 }
 0x29b   :  { %v566_v0 = vmul.f32 1.442695, %v564_v45 }
 0x29d   :  { %796 = vpow2.f32 %v566_v0 }
 0x2a3   :  { %v797_v1 = vpop.eup %796 }
 0x2a4   :  { %v570_v42 = vrot.slane %v797_v1, 4 }
 0x2a6   :  { %v571_v2 = vadd.f32 %v797_v1, %v570_v42 }
 0x2a8   :  { %v572_v3 = vrot.slane %v571_v2, 2 }
 0x2aa   :  { %v573_v43 = vadd.f32 %v572_v3, %v571_v2 }
 0x2ac   :  { %v574_v4 = vrot.slane %v573_v43, 1 }
 0x2ae   :  { %v575_v40 = vadd.f32 %v574_v4, %v573_v43 }
 0x2b0   :  { %798 = vrcp.f32 %v575_v40  ;;  %v593_v7 = vand.u32 2147483648, %v575_v40  ;;  %v591_v38 = vand.u32 2147483647, %v575_v40  ;;  %vm587_vm3 = vweird.f32 %v575_v40 }
 0x2b2   :  { %v594_v10 = vor.u32 1.1754944e-38, %v593_v7  ;;  %vm592_vm5 = vcmp.eq.f32.partialorder %v591_v38, 8.507059e+37 }
 0x2b6   :  { %v799_v5 = vpop.eup %798 }
 0x2b7   :  { %v583_v6 = vmul.f32 %v799_v5, %v575_v40  ;;  %vm588_vm2 = vweird.f32 %v799_v5 }
 0x2b8   :  { %vm589_vm4 = vmor %vm587_vm3, %vm588_vm2 }
 0x2b9   :  { %v584_v41 = vsub.f32 1.0, %v583_v6 }
 0x2bb   :  { %v585_v8 = vmul.f32 %v799_v5, %v584_v41 }
 0x2bd   :  { %v586_v9 = vadd.f32 %v799_v5, %v585_v8 }
 0x2bf   :  { %v590_v39 = vsel %vm589_vm4, %v799_v5, %v586_v9 }
 0x2c0   :  { %v595_v11 = vsel %vm592_vm5, %v594_v10, %v590_v39 }
 0x2c1   :  { %v610_v12 = vmul.f32 %v797_v1, %v595_v11 }
 0x2c3   :  { %645 = vst [vmem:[%s1164_s7] sm:$0xff] %v610_v12 }
 0x2c4   :  { %651 = vsyncpa [#allocation4], 1 }
 0x2c5   :  { %652 = vsyncpa [#allocation6], 1 }

// kernel: tpu_custom_call.1
= control target key start
LH: loop header
LB: loop body
LE: loop exit
PB: predicated region body
PF: predicated region fallthrough
CT: control target
= control target key end

     0   :  { %12 = vsyncpa [#allocation4], 0  ;;  %s1157_s0 = inlined_call_operand.vmem [shape: f32[32,1], index: 0, kind: input, shape index: {}]   ;;  %s1158_s1 = inlined_call_operand.vmem [shape: f32[128,32], index: 1, kind: input, shape index: {}]   ;;  %s1159_s2 = inlined_call_operand.hbm [shape: f32[128,256], index: 2, kind: input, shape index: {}]   ;;  %s1160_s3 = inlined_call_operand.vmem [shape: f32[64,128], index: 3, kind: input, shape index: {}]   ;;  %s1161_s4 = inlined_call_operand.vmem [shape: f32[64,256], index: 4, kind: input, shape index: {}]   ;;  %s1162_s5 = inlined_call_operand.hbm [shape: f32[8,64], index: 5, kind: input, shape index: {}]   ;;  %s1163_s6 = inlined_call_operand.hbm [shape: f32[8,256], index: 6, kind: input, shape index: {}]   ;;  %s1164_s7 = inlined_call_operand.vmem [shape: f32[8,1], index: 7, kind: output, shape index: {}]  }
   0x1   :  { %13 = vsyncpa [#allocation6], 0  ;;  %s85_s26 = sshll.u32 %s1162_s5, 4  ;;  %v50_v0 = vld [vmem:[%s1157_s0] sm:$0xff]  ;;  %v52_v1 = vld [vmem:[%s1157_s0 + $0x8] sm:$0xff]  ;;  %s876_s8 = smov [#allocation5]   ;;  %s86_s26 = int_to_ptr.hbm [resolvable:$true] %s85_s26 }
   0x2   :  { %s87_s9 = sshll.u32 %s876_s8, 4  ;;  %51 = vst [vmem:[#allocation2 + $0x28] sm:$0xff] %v50_v0  ;;  %v54_v2 = vld [vmem:[%s1157_s0 + $0x10] sm:$0xff]  ;;  %v56_v3 = vld [vmem:[%s1157_s0 + $0x18] sm:$0xff]  ;;  %s67_s15 = sshll.u32 %s1159_s2, 4  ;;  %s88_s9 = int_to_ptr.vmem [resolvable:$true] %s87_s9  ;;  %s68_s15 = int_to_ptr.hbm [resolvable:$true] %s67_s15 }
   0x3   :  { %53 = vst [vmem:[#allocation2] sm:$0xff] %v52_v1  ;;  %90 = dma.hbm_to_vmem [thread:$0]  %s86_s26, 128, %s88_s9, [#allocation6]  }
   0x4   :  { %55 = vst [vmem:[#allocation2 + $0x30] sm:$0xff] %v54_v2  ;;  %s877_s16 = smov [#allocation3]   ;;  %s878_s18 = smov 256  }
   0x5   :  { %57 = vst [vmem:[#allocation2 + $0x20] sm:$0xff] %v56_v3  ;;  %s69_s17 = sshll.u32 %s877_s16, 4  ;;  %s879_s19 = smov 16   ;;  %s70_s17 = int_to_ptr.vmem [resolvable:$true] %s69_s17 }
   0x6   :  { %75 = dma.hbm_to_vmem [thread:$0]  %s68_s15, 4096, %s70_s17, [#allocation4], %s878_s18, %s878_s18, %s879_s19  }
   0x7   :  { %s96_s0 = sshll.u32 %s1163_s6, 4  ;;  %s880_s22 = smov [#allocation7]   ;;  %s97_s0 = int_to_ptr.hbm [resolvable:$true] %s96_s0 }
   0x8   :  { %s98_s23 = sshll.u32 %s880_s22, 4  ;;  %s99_s23 = int_to_ptr.vmem [resolvable:$true] %s98_s23 }
   0x9   :  { %101 = dma.hbm_to_vmem [thread:$0]  %s97_s0, 256, %s99_s23, [#allocation6]  }
   0xa   :  { %872 = dma.done.wait [#allocation4], 4096  }
   0xb   :  { %873 = vsyncadd [#allocation4], 4294963200 }
   0xc   :  { %874 = dma.done.wait [#allocation6], 384  }
   0xd   :  { %875 = vsyncadd [#allocation6], 4294966912  ;;  %v122_v4 = vld [vmem:[#allocation2 + $0x20] sm:$0xff]  ;;  %v123_v5 = vld [vmem:[#allocation2 + $0x38] sm:$0xff]  ;;  %vm172_vm0 = vcmask 261120   ;;  %vm508_vm1 = vcmask 523264  }
   0xe   :  { %v120_v6 = vld [vmem:[#allocation2 + $0x30] sm:$0xff]  ;;  %233 = vmatpush.msra.mxu0 %v122_v4  ;;  %298 = vmatpush.msra.mxu1 %v123_v5  ;;  %v121_v7 = vld [vmem:[#allocation2 + $0x18] sm:$0xff]  ;;  %v118_v8 = vld [vmem:[#allocation2] sm:$0xff] }
   0xf   :  { %v119_v9 = vld [vmem:[#allocation2 + $0x8] sm:$0xff]  ;;  %v117_v11 = vld [vmem:[#allocation2 + $0x10] sm:$0xff]  ;;  %v124_v12 = vld [vmem:[%s1158_s1] sm:$0xff] }
  0x10   :  { %234 = vmatpush.msra.mxu0 %v120_v6  ;;  %299 = vmatpush.msra.mxu1 %v121_v7  ;;  %v116_v10 = vld [vmem:[#allocation2 + $0x28] sm:$0xff]  ;;  %v126_v14 = vld [vmem:[%s1158_s1 + $0x10] sm:$0xff]  ;;  %v127_v15 = vld [vmem:[%s1158_s1 + $0x18] sm:$0xff] }
  0x11   :  { %v125_v13 = vld [vmem:[%s1158_s1 + $0x8] sm:$0xff]  ;;  %v128_v16 = vld [vmem:[%s1158_s1 + $0x20] sm:$0xff]  ;;  %v130_v18 = vld [vmem:[%s1158_s1 + $0x30] sm:$0xff] }
  0x12   :  { %235 = vmatpush.msra.mxu0 %v118_v8  ;;  %300 = vmatpush.msra.mxu1 %v119_v9  ;;  %v129_v17 = vld [vmem:[%s1158_s1 + $0x28] sm:$0xff]  ;;  %v131_v19 = vld [vmem:[%s1158_s1 + $0x38] sm:$0xff]  ;;  %v132_v20 = vld [vmem:[%s1158_s1 + $0x40] sm:$0xff] }
  0x13   :  { %v133_v21 = vld [vmem:[%s1158_s1 + $0x48] sm:$0xff]  ;;  %v134_v22 = vld [vmem:[%s1158_s1 + $0x50] sm:$0xff]  ;;  %v135_v23 = vld [vmem:[%s1158_s1 + $0x58] sm:$0xff] }
  0x14   :  { %236 = vmatpush.msra.mxu0 %v116_v10  ;;  %301 = vmatpush.msra.mxu1 %v117_v11  ;;  %v136_v24 = vld [vmem:[%s1158_s1 + $0x60] sm:$0xff]  ;;  %v137_v25 = vld [vmem:[%s1158_s1 + $0x68] sm:$0xff]  ;;  %v138_v26 = vld [vmem:[%s1158_s1 + $0x70] sm:$0xff] }
  0x15   :  { %661 = vmatmul.msk.f32.vlgmr.msra.gmra.mxu0 %vm172_vm0, %v124_v12  ;;  %677 = vmatmul.msk.f32.vlgmr.msra.gmra.mxu1 %vm172_vm0, %v124_v12  ;;  %v139_v27 = vld [vmem:[%s1158_s1 + $0x78] sm:$0xff]  ;;  %v169_v58 = vld [vmem:[#allocation3 + $0xe8] sm:$0xff]  ;;  %v168_v59 = vld [vmem:[#allocation3 + $0xe0] sm:$0xff] }
  0x16   :  { %v170_v61 = vld [vmem:[#allocation3 + $0xf0] sm:$0xff]  ;;  %v171_v62 = vld [vmem:[#allocation3 + $0xf8] sm:$0xff]  ;;  %v165_v3 = vld [vmem:[#allocation3 + $0xc8] sm:$0xff] }
  0x17   :  { %v167_v63 = vld [vmem:[#allocation3 + $0xd8] sm:$0xff]  ;;  %v166_v0 = vld [vmem:[#allocation3 + $0xd0] sm:$0xff]  ;;  %v164_v7 = vld [vmem:[#allocation3 + $0xc0] sm:$0xff] }
  0x18   :  { %v163_v9 = vld [vmem:[#allocation3 + $0xb8] sm:$0xff]  ;;  %v162_v11 = vld [vmem:[#allocation3 + $0xb0] sm:$0xff] }
  0x1d   :  { %662 = vmatmul.msk.f32.gmra.mxu0 %vm172_vm0, %v125_v13  ;;  %678 = vmatmul.msk.f32.gmra.mxu1 %vm172_vm0, %v125_v13  ;;  %v161_v13 = vld [vmem:[#allocation3 + $0xa8] sm:$0xff] }
  0x25   :  { %663 = vmatmul.msk.f32.gmra.mxu0 %vm172_vm0, %v126_v14  ;;  %679 = vmatmul.msk.f32.gmra.mxu1 %vm172_vm0, %v126_v14 }
  0x2d   :  { %664 = vmatmul.msk.f32.gmra.mxu0 %vm172_vm0, %v127_v15  ;;  %680 = vmatmul.msk.f32.gmra.mxu1 %vm172_vm0, %v127_v15  ;;  %v160_v15 = vld [vmem:[#allocation3 + $0xa0] sm:$0xff] }
  0x35   :  { %665 = vmatmul.msk.f32.gmra.mxu0 %vm172_vm0, %v128_v16  ;;  %681 = vmatmul.msk.f32.gmra.mxu1 %vm172_vm0, %v128_v16 }
  0x3d   :  { %666 = vmatmul.msk.f32.gmra.mxu0 %vm172_vm0, %v129_v17  ;;  %682 = vmatmul.msk.f32.gmra.mxu1 %vm172_vm0, %v129_v17 }
  0x45   :  { %667 = vmatmul.msk.f32.gmra.mxu0 %vm172_vm0, %v130_v18  ;;  %683 = vmatmul.msk.f32.gmra.mxu1 %vm172_vm0, %v130_v18 }
  0x4d   :  { %668 = vmatmul.msk.f32.gmra.mxu0 %vm172_vm0, %v131_v19  ;;  %684 = vmatmul.msk.f32.gmra.mxu1 %vm172_vm0, %v131_v19  ;;  %v158_v19 = vld [vmem:[#allocation3 + $0x90] sm:$0xff] }
  0x55   :  { %669 = vmatmul.msk.f32.gmra.mxu0 %vm172_vm0, %v132_v20  ;;  %685 = vmatmul.msk.f32.gmra.mxu1 %vm172_vm0, %v132_v20 }
  0x5d   :  { %670 = vmatmul.msk.f32.gmra.mxu0 %vm172_vm0, %v133_v21  ;;  %686 = vmatmul.msk.f32.gmra.mxu1 %vm172_vm0, %v133_v21 }
  0x65   :  { %671 = vmatmul.msk.f32.gmra.mxu0 %vm172_vm0, %v134_v22  ;;  %687 = vmatmul.msk.f32.gmra.mxu1 %vm172_vm0, %v134_v22  ;;  %v159_v22 = vld [vmem:[#allocation3 + $0x98] sm:$0xff] }
  0x6d   :  { %672 = vmatmul.msk.f32.gmra.mxu0 %vm172_vm0, %v135_v23  ;;  %688 = vmatmul.msk.f32.gmra.mxu1 %vm172_vm0, %v135_v23 }
  0x75   :  { %673 = vmatmul.msk.f32.gmra.mxu0 %vm172_vm0, %v136_v24  ;;  %689 = vmatmul.msk.f32.gmra.mxu1 %vm172_vm0, %v136_v24 }
  0x7d   :  { %674 = vmatmul.msk.f32.gmra.mxu0 %vm172_vm0, %v137_v25  ;;  %690 = vmatmul.msk.f32.gmra.mxu1 %vm172_vm0, %v137_v25  ;;  %v156_v25 = vld [vmem:[#allocation3 + $0x80] sm:$0xff] }
  0x85   :  { %675 = vmatmul.msk.f32.gmra.mxu0 %vm172_vm0, %v138_v26  ;;  %691 = vmatmul.msk.f32.gmra.mxu1 %vm172_vm0, %v138_v26 }
  0x8d   :  { %676 = vmatmul.msk.f32.gmra.mxu0 %vm172_vm0, %v139_v27  ;;  %692 = vmatmul.msk.f32.gmra.mxu1 %vm172_vm0, %v139_v27  ;;  %v157_v27 = vld [vmem:[#allocation3 + $0x88] sm:$0xff] }
  0x92   :  { %v1022_v28 = vpop.f32.mrf.mxu0  ;;  %v1024_v29 = vpop.f32.mrf.mxu1 }
  0x9a   :  { %v1026_v30 = vpop.f32.mrf.mxu0  ;;  %v1028_v31 = vpop.f32.mrf.mxu1 }
  0xa2   :  { %v1030_v32 = vpop.f32.mrf.mxu0  ;;  %v1032_v33 = vpop.f32.mrf.mxu1 }
  0xaa   :  { %v1034_v34 = vpop.f32.mrf.mxu0  ;;  %v1036_v35 = vpop.f32.mrf.mxu1 }
  0xb2   :  { %v1038_v36 = vpop.f32.mrf.mxu0  ;;  %v1040_v37 = vpop.f32.mrf.mxu1 }
  0xba   :  { %v1042_v38 = vpop.f32.mrf.mxu0  ;;  %v1044_v39 = vpop.f32.mrf.mxu1 }
  0xc2   :  { %v1046_v40 = vpop.f32.mrf.mxu0  ;;  %v1048_v41 = vpop.f32.mrf.mxu1 }
  0xca   :  { %v1050_v42 = vpop.f32.mrf.mxu0  ;;  %v1052_v43 = vpop.f32.mrf.mxu1 }
  0xd2   :  { %v1054_v44 = vpop.f32.mrf.mxu0  ;;  %v1056_v45 = vpop.f32.mrf.mxu1 }
  0xda   :  { %v265_v46 = vpop.f32.mrf.mxu0  ;;  %v330_v47 = vpop.f32.mrf.mxu1 }
  0xe2   :  { %v268_v48 = vpop.f32.mrf.mxu0  ;;  %v333_v49 = vpop.f32.mrf.mxu1 }
  0xe3   :  { %v334_v20 = vadd.f32 %v333_v49, %v161_v13  ;;  %v269_v23 = vadd.f32 %v268_v48, %v160_v15  ;;  %v143_v13 = vld [vmem:[#allocation3 + $0x18] sm:$0xff]  ;;  %v140_v15 = vld [vmem:[#allocation3] sm:$0xff] }
  0xea   :  { %v271_v50 = vpop.f32.mrf.mxu0  ;;  %v336_v51 = vpop.f32.mrf.mxu1 }
  0xeb   :  { %v337_v16 = vadd.f32 %v336_v51, %v163_v9  ;;  %v272_v17 = vadd.f32 %v271_v50, %v162_v11  ;;  %v154_v50 = vld [vmem:[#allocation3 + $0x70] sm:$0xff]  ;;  %v145_v9 = vld [vmem:[#allocation3 + $0x28] sm:$0xff] }
  0xec   :  { %v142_v11 = vld [vmem:[#allocation3 + $0x10] sm:$0xff] }
  0xf2   :  { %v274_v52 = vpop.f32.mrf.mxu0  ;;  %v339_v53 = vpop.f32.mrf.mxu1 }
  0xf3   :  { %v340_v12 = vadd.f32 %v339_v53, %v165_v3  ;;  %v275_v14 = vadd.f32 %v274_v52, %v164_v7  ;;  %v266_v52 = vadd.f32 %v265_v46, %v158_v19  ;;  %v331_v53 = vadd.f32 %v330_v47, %v159_v22  ;;  %v153_v46 = vld [vmem:[#allocation3 + $0x68] sm:$0xff]  ;;  %v144_v7 = vld [vmem:[#allocation3 + $0x20] sm:$0xff] }
  0xf4   :  { %v307_v19 = vadd.f32 %v1028_v31, %v143_v13 }
  0xfa   :  { %v277_v54 = vpop.f32.mrf.mxu0  ;;  %v342_v55 = vpop.f32.mrf.mxu1 }
  0xfb   :  { %v343_v8 = vadd.f32 %v342_v55, %v167_v63  ;;  %v278_v10 = vadd.f32 %v277_v54, %v166_v0  ;;  %v155_v54 = vld [vmem:[#allocation3 + $0x78] sm:$0xff]  ;;  %v263_v55 = vadd.f32 %v1054_v44, %v156_v25  ;;  %v148_v0 = vld [vmem:[#allocation3 + $0x40] sm:$0xff] }
 0x102   :  { %v280_v56 = vpop.f32.mrf.mxu0  ;;  %v345_v57 = vpop.f32.mrf.mxu1 }
 0x103   :  { %v346_v60 = vadd.f32 %v345_v57, %v169_v58  ;;  %v281_v4 = vadd.f32 %v280_v56, %v168_v59  ;;  %v152_v56 = vld [vmem:[#allocation3 + $0x60] sm:$0xff]  ;;  %v328_v57 = vadd.f32 %v1056_v45, %v157_v27  ;;  %v260_v59 = vadd.f32 %v1050_v42, %v154_v50  ;;  %v385_v50 = vld [vmem:[%s1160_s3 + $0x10] sm:$0xff] }
 0x104   :  { %v257_v63 = vadd.f32 %v1046_v40, %v152_v56 }
 0x105   :  { %700 = vtanh.f32 %v346_v60  ;;  %v150_v60 = vld [vmem:[#allocation3 + $0x50] sm:$0xff] }
 0x106   :  { %v254_v3 = vadd.f32 %v1042_v38, %v150_v60 }
 0x10a   :  { %v283_v1 = vpop.f32.mrf.mxu0  ;;  %v348_v2 = vpop.f32.mrf.mxu1 }
 0x10b   :  { %v284_v5 = vadd.f32 %v283_v1, %v170_v61  ;;  %v349_v6 = vadd.f32 %v348_v2, %v171_v62  ;;  %v701_v18 = vpop.eup %700  ;;  %v325_v61 = vadd.f32 %v1052_v43, %v155_v54  ;;  %v151_v62 = vld [vmem:[#allocation3 + $0x58] sm:$0xff]  ;;  %v322_v1 = vadd.f32 %v1048_v41, %v153_v46  ;;  %v149_v2 = vld [vmem:[#allocation3 + $0x48] sm:$0xff]  ;;  %v146_v43 = vld [vmem:[#allocation3 + $0x30] sm:$0xff] }
 0x10c   :  { %v388_v54 = vld [vmem:[%s1160_s3 + $0x28] sm:$0xff] }
 0x10d   :  { %702 = vtanh.f32 %v284_v5  ;;  %v147_v5 = vld [vmem:[#allocation3 + $0x38] sm:$0xff] }
 0x10e   :  { %704 = vtanh.f32 %v349_v6  ;;  %v251_v6 = vadd.f32 %v1038_v36, %v148_v0 }
 0x10f   :  { %706 = vtanh.f32 %v281_v4  ;;  %v319_v4 = vadd.f32 %v1044_v39, %v151_v62 }
 0x110   :  { %708 = vtanh.f32 %v343_v8  ;;  %v316_v8 = vadd.f32 %v1040_v37, %v149_v2  ;;  %v403_v2 = vld [vmem:[%s1161_s4 + $0x60] sm:$0xff] }
 0x111   :  { %710 = vtanh.f32 %v278_v10  ;;  %v248_v10 = vadd.f32 %v1034_v34, %v146_v43  ;;  %v405_v43 = vld [vmem:[%s1161_s4 + $0x70] sm:$0xff] }
 0x112   :  { %712 = vtanh.f32 %v340_v12  ;;  %v313_v12 = vadd.f32 %v1036_v35, %v147_v5  ;;  %v401_v5 = vld [vmem:[%s1161_s4 + $0x50] sm:$0xff] }
 0x113   :  { %v703_v21 = vpop.eup %702  ;;  %714 = vtanh.f32 %v275_v14  ;;  %v245_v14 = vadd.f32 %v1030_v32, %v144_v7 }
 0x114   :  { %v705_v24 = vpop.eup %704  ;;  %716 = vtanh.f32 %v337_v16  ;;  %407 = vmatpush.msra.mxu2 %v703_v21  ;;  %v310_v16 = vadd.f32 %v1032_v33, %v145_v9  ;;  %v399_v9 = vld [vmem:[%s1161_s4 + $0x40] sm:$0xff] }
 0x115   :  { %v707_v26 = vpop.eup %706  ;;  %718 = vtanh.f32 %v272_v17  ;;  %448 = vmatpush.msra.mxu3 %v705_v24  ;;  %v141_v17 = vld [vmem:[#allocation3 + $0x8] sm:$0xff] }
 0x116   :  { %v709_v51 = vpop.eup %708  ;;  %720 = vtanh.f32 %v334_v20  ;;  %408 = vmatpush.msra.mxu2 %v707_v26  ;;  %v239_v20 = vadd.f32 %v1022_v28, %v140_v15  ;;  %v304_v33 = vadd.f32 %v1024_v29, %v141_v17  ;;  %v383_v26 = vld [vmem:[%s1160_s3] sm:$0xff] }
 0x117   :  { %v711_v49 = vpop.eup %710  ;;  %722 = vtanh.f32 %v269_v23  ;;  %449 = vmatpush.msra.mxu3 %v701_v18  ;;  %v242_v18 = vadd.f32 %v1026_v30, %v142_v11  ;;  %v398_v11 = vld [vmem:[%s1161_s4 + $0x38] sm:$0xff]  ;;  %v395_v15 = vld [vmem:[%s1161_s4 + $0x20] sm:$0xff] }
 0x118   :  { %v713_v48 = vpop.eup %712  ;;  %409 = vmatpush.msra.mxu2 %v711_v49  ;;  %724 = vtanh.f32 %v266_v52  ;;  %v387_v49 = vld [vmem:[%s1160_s3 + $0x20] sm:$0xff] }
 0x119   :  { %v715_v58 = vpop.eup %714  ;;  %450 = vmatpush.msra.mxu3 %v709_v51  ;;  %726 = vtanh.f32 %v331_v53  ;;  %v384_v51 = vld [vmem:[%s1160_s3 + $0x8] sm:$0xff]  ;;  %v386_v53 = vld [vmem:[%s1160_s3 + $0x18] sm:$0xff] }
 0x11a   :  { %v717_v47 = vpop.eup %716  ;;  %410 = vmatpush.msra.mxu2 %v715_v58  ;;  %728 = vtanh.f32 %v263_v55  ;;  %v389_v55 = vld [vmem:[%s1160_s3 + $0x30] sm:$0xff] }
 0x11b   :  { %v719_v44 = vpop.eup %718  ;;  %451 = vmatpush.msra.mxu3 %v713_v48  ;;  %730 = vtanh.f32 %v328_v57  ;;  %v390_v48 = vld [vmem:[%s1160_s3 + $0x38] sm:$0xff] }
 0x11c   :  { %v721_v45 = vpop.eup %720  ;;  %411 = vmatpush.msra.mxu2 %v719_v44  ;;  %732 = vtanh.f32 %v260_v59 }
 0x11d   :  { %v723_v42 = vpop.eup %722  ;;  %452 = vmatpush.msra.mxu3 %v717_v47  ;;  %734 = vtanh.f32 %v325_v61 }
 0x11e   :  { %412 = vmatpush.msra.mxu2 %v723_v42  ;;  %v725_v40 = vpop.eup %724  ;;  %736 = vtanh.f32 %v257_v63  ;;  %v404_v42 = vld [vmem:[%s1161_s4 + $0x68] sm:$0xff] }
 0x11f   :  { %453 = vmatpush.msra.mxu3 %v721_v45  ;;  %v727_v41 = vpop.eup %726  ;;  %738 = vtanh.f32 %v322_v1 }
 0x120   :  { %413 = vmatpush.msra.mxu2 %v725_v40  ;;  %v729_v38 = vpop.eup %728  ;;  %740 = vtanh.f32 %v254_v3  ;;  %v406_v40 = vld [vmem:[%s1161_s4 + $0x78] sm:$0xff] }
 0x121   :  { %454 = vmatpush.msra.mxu3 %v727_v41  ;;  %v731_v39 = vpop.eup %730  ;;  %742 = vtanh.f32 %v319_v4  ;;  %v402_v4 = vld [vmem:[%s1161_s4 + $0x58] sm:$0xff]  ;;  %v400_v41 = vld [vmem:[%s1161_s4 + $0x48] sm:$0xff] }
 0x122   :  { %414 = vmatpush.msra.mxu2 %v729_v38  ;;  %v733_v36 = vpop.eup %732  ;;  %744 = vtanh.f32 %v251_v6 }
 0x123   :  { %455 = vmatpush.msra.mxu3 %v731_v39  ;;  %v735_v37 = vpop.eup %734  ;;  %746 = vtanh.f32 %v316_v8 }
 0x124   :  { %415 = vmatpush.msra.mxu2 %v733_v36  ;;  %v737_v34 = vpop.eup %736  ;;  %748 = vtanh.f32 %v248_v10  ;;  %v397_v36 = vld [vmem:[%s1161_s4 + $0x30] sm:$0xff] }
 0x125   :  { %456 = vmatpush.msra.mxu3 %v735_v37  ;;  %v739_v35 = vpop.eup %738  ;;  %750 = vtanh.f32 %v313_v12 }
 0x126   :  { %416 = vmatpush.msra.mxu2 %v737_v34  ;;  %v741_v32 = vpop.eup %740  ;;  %752 = vtanh.f32 %v245_v14  ;;  %v396_v14 = vld [vmem:[%s1161_s4 + $0x28] sm:$0xff] }
 0x127   :  { %457 = vmatpush.msra.mxu3 %v739_v35  ;;  %v743_v21 = vpop.eup %742  ;;  %754 = vtanh.f32 %v310_v16 }
 0x128   :  { %417 = vmatpush.msra.mxu2 %v741_v32  ;;  %v745_v22 = vpop.eup %744  ;;  %756 = vtanh.f32 %v242_v18  ;;  %v393_v18 = vld [vmem:[%s1161_s4 + $0x10] sm:$0xff]  ;;  %v394_v32 = vld [vmem:[%s1161_s4 + $0x18] sm:$0xff] }
 0x129   :  { %458 = vmatpush.msra.mxu3 %v743_v21  ;;  %v747_v30 = vpop.eup %746  ;;  %758 = vtanh.f32 %v307_v19 }
 0x12a   :  { %418 = vmatpush.msra.mxu2 %v745_v22  ;;  %v749_v23 = vpop.eup %748  ;;  %760 = vtanh.f32 %v239_v20 }
 0x12b   :  { %459 = vmatpush.msra.mxu3 %v747_v30  ;;  %v751_v31 = vpop.eup %750  ;;  %762 = vtanh.f32 %v304_v33  ;;  %v391_v33 = vld [vmem:[%s1161_s4] sm:$0xff]  ;;  %v392_v30 = vld [vmem:[%s1161_s4 + $0x8] sm:$0xff] }
 0x12c   :  { %419 = vmatpush.msra.mxu2 %v749_v23  ;;  %v753_v28 = vpop.eup %752 }
 0x12d   :  { %460 = vmatpush.msra.mxu3 %v751_v31  ;;  %v755_v24 = vpop.eup %754 }
 0x12e   :  { %420 = vmatpush.msra.mxu2 %v753_v28  ;;  %v757_v25 = vpop.eup %756 }
 0x12f   :  { %461 = vmatpush.msra.mxu3 %v755_v24  ;;  %v759_v29 = vpop.eup %758 }
 0x130   :  { %421 = vmatpush.msra.mxu2 %v757_v25  ;;  %v761_v27 = vpop.eup %760 }
 0x131   :  { %462 = vmatpush.msra.mxu3 %v759_v29  ;;  %v763_v52 = vpop.eup %762 }
 0x132   :  { %422 = vmatpush.msra.mxu2 %v761_v27 }
 0x133   :  { %463 = vmatpush.msra.mxu3 %v763_v52  ;;  %423 = vmatmul.f32.vlgmr.msra.gmra.mxu2 %v383_v26 }
 0x134   :  { %464 = vmatmul.f32.vlgmr.msra.gmra.mxu3 %v383_v26 }
 0x13b   :  { %426 = vmatmul.f32.gmra.mxu2 %v384_v51 }
 0x13c   :  { %467 = vmatmul.f32.gmra.mxu3 %v384_v51 }
 0x143   :  { %429 = vmatmul.f32.gmra.mxu2 %v385_v50 }
 0x144   :  { %470 = vmatmul.f32.gmra.mxu3 %v385_v50 }
 0x14b   :  { %432 = vmatmul.f32.gmra.mxu2 %v386_v53 }
 0x14c   :  { %473 = vmatmul.f32.gmra.mxu3 %v386_v53 }
 0x153   :  { %435 = vmatmul.f32.gmra.mxu2 %v387_v49 }
 0x154   :  { %476 = vmatmul.f32.gmra.mxu3 %v387_v49 }
 0x15b   :  { %438 = vmatmul.f32.gmra.mxu2 %v388_v54 }
 0x15c   :  { %479 = vmatmul.f32.gmra.mxu3 %v388_v54 }
 0x163   :  { %441 = vmatmul.f32.gmra.mxu2 %v389_v55 }
 0x164   :  { %482 = vmatmul.f32.gmra.mxu3 %v389_v55  ;;  %v505_v55 = vld [vmem:[#allocation5] sm:$0xff] }
 0x16b   :  { %444 = vmatmul.f32.gmra.mxu2 %v390_v48 }
 0x16c   :  { %485 = vmatmul.f32.gmra.mxu3 %v390_v48 }
 0x1b6   :  { %v1100_v56 = vpop.f32.mrf.mxu2 }
 0x1b7   :  { %v1102_v57 = vpop.f32.mrf.mxu3  ;;  %v425_v25 = vadd.f32 %v1100_v56, %v391_v33 }
 0x1b8   :  { %v466_v26 = vadd.f32 %v1102_v57, %v392_v30  ;;  %v506_v57 = vld [vmem:[#allocation7] sm:$0xff] }
 0x1be   :  { %v427_v58 = vpop.f32.mrf.mxu2 }
 0x1bf   :  { %v468_v46 = vpop.f32.mrf.mxu3  ;;  %v428_v23 = vadd.f32 %v427_v58, %v393_v18 }
 0x1c0   :  { %v469_v28 = vadd.f32 %v468_v46, %v394_v32 }
 0x1c6   :  { %v430_v59 = vpop.f32.mrf.mxu2 }
 0x1c7   :  { %v471_v47 = vpop.f32.mrf.mxu3  ;;  %v431_v20 = vadd.f32 %v430_v59, %v395_v15 }
 0x1c8   :  { %v472_v35 = vadd.f32 %v471_v47, %v396_v14 }
 0x1ce   :  { %v433_v60 = vpop.f32.mrf.mxu2 }
 0x1cf   :  { %v474_v61 = vpop.f32.mrf.mxu3  ;;  %v434_v34 = vadd.f32 %v433_v60, %v397_v36 }
 0x1d0   :  { %v475_v16 = vadd.f32 %v474_v61, %v398_v11 }
 0x1d6   :  { %v436_v44 = vpop.f32.mrf.mxu2 }
 0x1d7   :  { %v477_v62 = vpop.f32.mrf.mxu3  ;;  %v437_v37 = vadd.f32 %v436_v44, %v399_v9 }
 0x1d8   :  { %v478_v13 = vadd.f32 %v477_v62, %v400_v41 }
 0x1de   :  { %v439_v63 = vpop.f32.mrf.mxu2 }
 0x1df   :  { %v480_v45 = vpop.f32.mrf.mxu3  ;;  %v440_v12 = vadd.f32 %v439_v63, %v401_v5 }
 0x1e0   :  { %v481_v10 = vadd.f32 %v480_v45, %v402_v4 }
 0x1e6   :  { %v442_v0 = vpop.f32.mrf.mxu2 }
 0x1e7   :  { %v483_v1 = vpop.f32.mrf.mxu3  ;;  %v443_v7 = vadd.f32 %v442_v0, %v403_v2 }
 0x1e8   :  { %v484_v3 = vadd.f32 %v483_v1, %v404_v42 }
 0x1ea   :  { %764 = vtanh.f32 %v484_v3 }
 0x1ee   :  { %v445_v6 = vpop.f32.mrf.mxu2 }
 0x1ef   :  { %v446_v8 = vadd.f32 %v445_v6, %v405_v43  ;;  %v486_v38 = vpop.f32.mrf.mxu3 }
 0x1f0   :  { %v487_v39 = vadd.f32 %v486_v38, %v406_v40  ;;  %v765_v17 = vpop.eup %764 }
 0x1f1   :  { %766 = vtanh.f32 %v446_v8 }
 0x1f2   :  { %768 = vtanh.f32 %v487_v39 }
 0x1f3   :  { %770 = vtanh.f32 %v443_v7 }
 0x1f4   :  { %772 = vtanh.f32 %v481_v10 }
 0x1f5   :  { %774 = vtanh.f32 %v440_v12 }
 0x1f6   :  { %776 = vtanh.f32 %v478_v13 }
 0x1f7   :  { %v767_v19 = vpop.eup %766  ;;  %778 = vtanh.f32 %v437_v37 }
 0x1f8   :  { %v769_v21 = vpop.eup %768  ;;  %780 = vtanh.f32 %v475_v16  ;;  %520 = vmatpush.msrb.mxu2 %v767_v19 }
 0x1f9   :  { %v771_v22 = vpop.eup %770  ;;  %782 = vtanh.f32 %v434_v34  ;;  %540 = vmatpush.msrb.mxu3 %v769_v21 }
 0x1fa   :  { %v773_v31 = vpop.eup %772  ;;  %784 = vtanh.f32 %v472_v35  ;;  %521 = vmatpush.msrb.mxu2 %v771_v22 }
 0x1fb   :  { %v775_v24 = vpop.eup %774  ;;  %786 = vtanh.f32 %v431_v20  ;;  %541 = vmatpush.msrb.mxu3 %v765_v17 }
 0x1fc   :  { %v777_v29 = vpop.eup %776  ;;  %522 = vmatpush.msrb.mxu2 %v775_v24  ;;  %788 = vtanh.f32 %v428_v23 }
 0x1fd   :  { %v779_v27 = vpop.eup %778  ;;  %542 = vmatpush.msrb.mxu3 %v773_v31  ;;  %790 = vtanh.f32 %v469_v28 }
 0x1fe   :  { %v781_v52 = vpop.eup %780  ;;  %523 = vmatpush.msrb.mxu2 %v779_v27  ;;  %792 = vtanh.f32 %v425_v25 }
 0x1ff   :  { %v783_v51 = vpop.eup %782  ;;  %543 = vmatpush.msrb.mxu3 %v777_v29  ;;  %794 = vtanh.f32 %v466_v26 }
 0x200   :  { %v785_v50 = vpop.eup %784  ;;  %524 = vmatpush.msrb.mxu2 %v783_v51 }
 0x201   :  { %v787_v53 = vpop.eup %786  ;;  %544 = vmatpush.msrb.mxu3 %v781_v52 }
 0x202   :  { %525 = vmatpush.msrb.mxu2 %v787_v53  ;;  %v789_v49 = vpop.eup %788 }
 0x203   :  { %545 = vmatpush.msrb.mxu3 %v785_v50  ;;  %v791_v54 = vpop.eup %790 }
 0x204   :  { %526 = vmatpush.msrb.mxu2 %v789_v49  ;;  %v793_v48 = vpop.eup %792 }
 0x205   :  { %546 = vmatpush.msrb.mxu3 %v791_v54  ;;  %v795_v56 = vpop.eup %794 }
 0x206   :  { %527 = vmatpush.msrb.mxu2 %v793_v48 }
 0x207   :  { %547 = vmatpush.msrb.mxu3 %v795_v56  ;;  %693 = vmatmul.msk.f32.vlgmr.msrb.gmra.mxu2 %vm508_vm1, %v505_v55 }
 0x208   :  { %694 = vmatmul.msk.f32.vlgmr.msrb.gmra.mxu3 %vm508_vm1, %v505_v55 }
 0x28a   :  { %v529_v58 = vpop.f32.mrf.mxu2 }
 0x28b   :  { %v530_v46 = vadd.f32 %v529_v58, %v506_v57  ;;  %v549_v59 = vpop.f32.mrf.mxu3 }
 0x28d   :  { %v552_v47 = vrot.slane %v530_v46, 4 }
 0x28f   :  { %v553_v60 = vmax.f32 %v530_v46, %v552_v47 }
 0x291   :  { %v554_v61 = vrot.slane %v553_v60, 2 }
 0x293   :  { %v555_v44 = vmax.f32 %v553_v60, %v554_v61 }
 0x295   :  { %v556_v62 = vrot.slane %v555_v44, 1 }
 0x297   :  { %v557_v63 = vmax.f32 %v555_v44, %v556_v62 }
 0x299   :  { %v564_v45 = vsub.f32 %v530_v46, %v557_v63 }
 0x29b   :  { %v566_v0 = vmul.f32 1.442695, %v564_v45 }
 0x29d   :  { %796 = vpow2.f32 %v566_v0 }
 0x2a3   :  { %v797_v1 = vpop.eup %796 }
 0x2a4   :  { %v570_v42 = vrot.slane %v797_v1, 4 }
 0x2a6   :  { %v571_v2 = vadd.f32 %v797_v1, %v570_v42 }
 0x2a8   :  { %v572_v3 = vrot.slane %v571_v2, 2 }
 0x2aa   :  { %v573_v43 = vadd.f32 %v572_v3, %v571_v2 }
 0x2ac   :  { %v574_v4 = vrot.slane %v573_v43, 1 }
 0x2ae   :  { %v575_v40 = vadd.f32 %v574_v4, %v573_v43 }
 0x2b0   :  { %798 = vrcp.f32 %v575_v40  ;;  %v593_v7 = vand.u32 2147483648, %v575_v40  ;;  %v591_v38 = vand.u32 2147483647, %v575_v40  ;;  %vm587_vm3 = vweird.f32 %v575_v40 }
 0x2b2   :  { %v594_v10 = vor.u32 1.1754944e-38, %v593_v7  ;;  %vm592_vm5 = vcmp.eq.f32.partialorder %v591_v38, 8.507059e+37 }
 0x2b6   :  { %v799_v5 = vpop.eup %798 }
 0x2b7   :  { %v583_v6 = vmul.f32 %v799_v5, %v575_v40  ;;  %vm588_vm2 = vweird.f32 %v799_v5 }
 0x2b8   :  { %vm589_vm4 = vmor %vm587_vm3, %vm588_vm2 }
 0x2b9   :  { %v584_v41 = vsub.f32 1.0, %v583_v6 }
 0x2bb   :  { %v585_v8 = vmul.f32 %v799_v5, %v584_v41 }
 0x2bd   :  { %v586_v9 = vadd.f32 %v799_v5, %v585_v8 }
 0x2bf   :  { %v590_v39 = vsel %vm589_vm4, %v799_v5, %v586_v9 }
 0x2c0   :  { %v595_v11 = vsel %vm592_vm5, %v594_v10, %v590_v39 }
 0x2c1   :  { %v610_v12 = vmul.f32 %v797_v1, %v595_v11 }
 0x2c3   :  { %645 = vst [vmem:[%s1164_s7] sm:$0xff] %v610_v12 }
 0x2c4   :  { %651 = vsyncpa [#allocation4], 1 }
 0x2c5   :  { %652 = vsyncpa [#allocation6], 1 }

</bundles_post_ra>
